<compile_context>
chip_gen: v7x
topology: tpu7x:2x2x1
jax: 0.10.0
libtpu: 0.0.40
codegen_flags: <defaults>
</compile_context>

<pallas_src>
import jax
import jax.numpy as jnp
import numpy as np
from jax import lax
from jax.experimental import pallas as pl
from jax.experimental.pallas import tpu as pltpu

# Small, module-consistent sizes: batch=8, n_attributes=4 * n_values=4 -> 16
# input features, hidden=32, embed=32, vocab=16, max_len=8, 2 senders.
B, IN, H, E, V, L = 8, 16, 32, 32, 16, 8
_HI = jax.lax.Precision.HIGHEST   # only for the one-time wrapper-side folding


def _rollout_kernel(x_ref, w0_ref, b0_ref, wcat_ref, bcat_ref,
                    wout_ref, bout_ref, out_ref):
    """Both senders' full greedy rollouts, interleaved via a leading s=2 axis."""
    x = x_ref[...]        # (2, B, IN)   bf16  (x broadcast per sender)
    w0 = w0_ref[...]      # (2, IN, H)   bf16  (W_hh @ W_agent).T
    b0 = b0_ref[...]      # (2, 1, H)    f32   sos@W_ih.T + b_ag@W_hh.T + b_ih + b_hh
    wcat = wcat_ref[...]  # (2, V+H, H)  bf16  [emb@W_ih.T ; W_hh.T]
    bcat = bcat_ref[...]  # (2, 1, H)    f32   b_ih + b_hh
    wout = wout_ref[...]  # (2, H, V)    bf16  W_out.T
    bout = bout_ref[...]  # (2, 1, V)    f32

    iota_v = lax.broadcasted_iota(jnp.int32, (2, B, V), 2)   # hoisted

    def bmm(a, w):        # sender-batched bf16 matmul, f32 accumulate (MXU)
        return jnp.einsum("sbk,skh->sbh", a, w,
                          preferred_element_type=jnp.float32)

    # step 0: agent Linear + sos input contribution pre-folded -> one matmul
    z = bmm(x, w0) + b0                                       # (2, B, H)

    seq_cols, lp_cols, ent_cols = [], [], []
    for t in range(L):                                        # static unroll
        h = jnp.tanh(z)                                       # (2, B, H) f32
        logits = bmm(h.astype(jnp.bfloat16), wout) + bout     # (2, B, V)
        m = jnp.max(logits, axis=-1, keepdims=True)
        lse = m + jnp.log(jnp.sum(jnp.exp(logits - m), axis=-1, keepdims=True))
        lp = logits - lse                                     # log-probs
        p = jnp.exp(lp)
        ent = -jnp.sum(p * lp, axis=-1, keepdims=True)        # (2, B, 1)
        chosen = m - lse                                      # greedy logp == max lp
        idx = jnp.min(jnp.where(logits == m, iota_v, V),
                      axis=-1, keepdims=True)                 # (2, B, 1) int32
        seq_cols.append(idx.astype(jnp.float32))
        lp_cols.append(chosen)
        ent_cols.append(ent)
        if t + 1 < L:                                         # fused ih/hh matmul
            onehot = jnp.where(iota_v == idx, 1.0, 0.0).astype(jnp.bfloat16)
            inp = jnp.concatenate([onehot, h.astype(jnp.bfloat16)], axis=-1)
            z = bmm(inp, wcat) + bcat                         # (2, B, H)

    # single lane-packed output slab: [seq | logp | entropy] along the lane axis
    out_ref[...] = jnp.concatenate(
        [jnp.concatenate(seq_cols, axis=-1),
         jnp.concatenate(lp_cols, axis=-1),
         jnp.concatenate(ent_cols, axis=-1)], axis=-1)        # (2, B, 3L)


def _fold_params(x, params):
    """One-time (off the serial chain) weight folding / transposition / cast."""
    aw, ab, sos, emb, wih, bih, whh, bhh, wout, bout = params
    emb_ih = jnp.einsum("sve,she->svh", emb, wih, precision=_HI)   # emb @ W_ih.T
    whh_t = jnp.swapaxes(whh, 1, 2)                                 # W_hh.T
    wcat = jnp.concatenate([emb_ih, whh_t], axis=1)                 # (2, V+H, H)
    bcat = bih + bhh                                                # (2, 1, H)
    sos_ih = jnp.einsum("sxe,she->sxh", sos, wih, precision=_HI)    # sos @ W_ih.T
    ab_whh = jnp.einsum("sxh,sgh->sxg", ab, whh, precision=_HI)     # b_ag @ W_hh.T
    b0 = sos_ih + ab_whh + bcat                                     # (2, 1, H)
    w0 = jnp.einsum("sgh,shi->sig", whh, aw, precision=_HI)         # (W_hh@W_ag).T
    wout_t = jnp.swapaxes(wout, 1, 2)                               # (2, H, V)
    x2 = jnp.broadcast_to(x[None], (2,) + x.shape)                  # (2, B, IN)
    bf16, f32 = jnp.bfloat16, jnp.float32
    return (x2.astype(bf16), w0.astype(bf16), b0.astype(f32),
            wcat.astype(bf16), bcat.astype(f32),
            wout_t.astype(bf16), bout.astype(f32))


def plus_one_combined_senders(x, params):
    """PlusOneWrapper(wrapped).forward: (sequence + 1, log_probs, entropy)."""
    ins = _fold_params(x, params)
    zero3 = lambda i: (0, 0, 0)

    grid_spec = pltpu.PrefetchScalarGridSpec(
        num_scalar_prefetch=0,
        grid=(1,),                      # both senders interleaved in one step
        in_specs=[pl.BlockSpec(a.shape, zero3) for a in ins],
        out_specs=pl.BlockSpec((2, B, 3 * L), zero3),
    )
    slab = pl.pallas_call(
        _rollout_kernel,
        out_shape=jax.ShapeDtypeStruct((2, B, 3 * L), jnp.float32),
        grid_spec=grid_spec,
        compiler_params=pltpu.CompilerParams(dimension_semantics=("arbitrary",)),
    )(*ins)

    seq_f = slab[:, :, :L]
    logp = slab[:, :, L:2 * L]
    entr = slab[:, :, 2 * L:]
    seq = seq_f.astype(jnp.int32)

    zi = jnp.zeros((B, 1), jnp.int32)
    zf = jnp.zeros((B, 1), jnp.float32)
    # wrapped: per-sender EOS zero column + concat along dim 1; wrapper: +1 on r1.
    seq_c = jnp.concatenate([seq[0], zi, seq[1], zi], axis=1) + 1
    logp_c = jnp.concatenate([logp[0], zf, logp[1], zf], axis=1)
    entr_c = jnp.concatenate([entr[0], zf, entr[1], zf], axis=1)
    return seq_c, logp_c, entr_c


# ---------------- pure-JAX reference (same folded math, no Pallas) ----------
def plus_one_ref(x, params):
    x2, w0, b0, wcat, bcat, wout_t, bout = _fold_params(x, params)
    iota_v = jnp.arange(V, dtype=jnp.int32)[None, None, :]
    bmm = lambda a, w: jnp.einsum("sbk,skh->sbh", a, w,
                                  preferred_element_type=jnp.float32)
    z = bmm(x2, w0) + b0
    seqs, lps, ents = [], [], []
    for t in range(L):
        h = jnp.tanh(z)
        logits = bmm(h.astype(jnp.bfloat16), wout_t) + bout
        lp = jax.nn.log_softmax(logits, axis=-1)
        ents.append(-jnp.sum(jnp.exp(lp) * lp, axis=-1))
        idx = jnp.argmax(logits, axis=-1)
        lps.append(jnp.take_along_axis(lp, idx[..., None], axis=-1)[..., 0])
        seqs.append(idx.astype(jnp.int32))
        if t + 1 < L:
            onehot = jnp.where(iota_v == idx[..., None], 1.0, 0.0).astype(jnp.bfloat16)
            inp = jnp.concatenate([onehot, h.astype(jnp.bfloat16)], axis=-1)
            z = bmm(inp, wcat) + bcat
    seq = jnp.stack(seqs, axis=-1)       # (2, B, L)
    lp_ = jnp.stack(lps, axis=-1)
    en = jnp.stack(ents, axis=-1)
    zi = jnp.zeros((B, 1), jnp.int32)
    zf = jnp.zeros((B, 1), jnp.float32)
    seq_c = jnp.concatenate([seq[0], zi, seq[1], zi], axis=1) + 1
    logp_c = jnp.concatenate([lp_[0], zf, lp_[1], zf], axis=1)
    entr_c = jnp.concatenate([en[0], zf, en[1], zf], axis=1)
    return seq_c, logp_c, entr_c


if __name__ == "__main__":
    key = jax.random.PRNGKey(0)
    ks = jax.random.split(key, 12)

    def rnd(k, shape, scale=0.5):
        return (scale * jax.random.normal(k, shape)).astype(jnp.float32)

    # input: flattened one-hot attributes (n_attributes=4, n_values=4 -> IN=16)
    vals = jax.random.randint(ks[0], (B, 4), 0, 4)
    x = jax.nn.one_hot(vals, 4, dtype=jnp.float32).reshape(B, IN)

    params = (
        rnd(ks[1], (2, H, IN)),    # agent Linear weight
        rnd(ks[2], (2, 1, H)),     # agent Linear bias
        rnd(ks[3], (2, 1, E)),     # sos embedding
        rnd(ks[4], (2, V, E)),     # symbol embedding table
        rnd(ks[5], (2, H, E)),     # RNNCell W_ih
        rnd(ks[6], (2, 1, H)),     # RNNCell b_ih
        rnd(ks[7], (2, H, H)),     # RNNCell W_hh
        rnd(ks[8], (2, 1, H)),     # RNNCell b_hh
        rnd(ks[9], (2, V, H)),     # hidden_to_output weight
        rnd(ks[10], (2, 1, V)),    # hidden_to_output bias
    )

    seq, logp, entr = jax.block_until_ready(plus_one_combined_senders(x, params))
    seq_r, logp_r, entr_r = plus_one_ref(x, params)

    T = 2 * (L + 1)
    assert seq.shape == (B, T) and seq.dtype == jnp.int32
    assert logp.shape == (B, T) and entr.shape == (B, T)
    # PlusOneWrapper: every symbol shifted by +1; EOS columns become exactly 1.
    assert int(jnp.min(seq)) >= 1 and int(jnp.max(seq)) <= V
    assert np.all(np.asarray(seq[:, L]) == 1) and np.all(np.asarray(seq[:, -1]) == 1)
    assert np.array_equal(np.asarray(seq), np.asarray(seq_r))
    assert np.allclose(np.asarray(logp), np.asarray(logp_r), atol=1e-3, rtol=1e-3)
    assert np.allclose(np.asarray(entr), np.asarray(entr_r), atol=1e-3, rtol=1e-3)
    print("KERNEL_OK")
</pallas_src>

<mosaic_0001>
module attributes {stable_mosaic.version = 11 : i64} {
  func.func @_rollout_kernel(%arg0: i32, %arg1: memref<2x8x16xbf16, #tpu.memory_space<vmem>>, %arg2: memref<2x16x32xbf16, #tpu.memory_space<vmem>>, %arg3: memref<2x1x32xf32, #tpu.memory_space<vmem>>, %arg4: memref<2x48x32xbf16, #tpu.memory_space<vmem>>, %arg5: memref<2x1x32xf32, #tpu.memory_space<vmem>>, %arg6: memref<2x32x16xbf16, #tpu.memory_space<vmem>>, %arg7: memref<2x1x16xf32, #tpu.memory_space<vmem>>, %arg8: memref<2x8x24xf32, #tpu.memory_space<vmem>>) attributes {dimension_semantics = [#tpu.dimension_semantics<arbitrary>], iteration_bounds = array<i64: 1>, scalar_prefetch = 0 : i64, scratch_operands = 0 : i64, tpu.core_type = #tpu.core_type<tc>, window_params = [{pipeline_mode = #tpu.pipeline_mode<synchronous>, transform_indices = @transform_0, window_bounds = array<i64: 2, 8, 16>}, {pipeline_mode = #tpu.pipeline_mode<synchronous>, transform_indices = @transform_1, window_bounds = array<i64: 2, 16, 32>}, {pipeline_mode = #tpu.pipeline_mode<synchronous>, transform_indices = @transform_2, window_bounds = array<i64: 2, 1, 32>}, {pipeline_mode = #tpu.pipeline_mode<synchronous>, transform_indices = @transform_3, window_bounds = array<i64: 2, 48, 32>}, {pipeline_mode = #tpu.pipeline_mode<synchronous>, transform_indices = @transform_4, window_bounds = array<i64: 2, 1, 32>}, {pipeline_mode = #tpu.pipeline_mode<synchronous>, transform_indices = @transform_5, window_bounds = array<i64: 2, 32, 16>}, {pipeline_mode = #tpu.pipeline_mode<synchronous>, transform_indices = @transform_6, window_bounds = array<i64: 2, 1, 16>}, {pipeline_mode = #tpu.pipeline_mode<synchronous>, transform_indices = @transform_7, window_bounds = array<i64: 2, 8, 24>}]} {
    %c0 = arith.constant 0 : index
    %c0_0 = arith.constant 0 : index
    %c0_1 = arith.constant 0 : index
    %0 = vector.load %arg1[%c0, %c0_0, %c0_1] : memref<2x8x16xbf16, #tpu.memory_space<vmem>>, vector<2x8x16xbf16>
    %c0_2 = arith.constant 0 : index
    %c0_3 = arith.constant 0 : index
    %c0_4 = arith.constant 0 : index
    %1 = vector.load %arg2[%c0_2, %c0_3, %c0_4] : memref<2x16x32xbf16, #tpu.memory_space<vmem>>, vector<2x16x32xbf16>
    %c0_5 = arith.constant 0 : index
    %c0_6 = arith.constant 0 : index
    %c0_7 = arith.constant 0 : index
    %2 = vector.load %arg3[%c0_5, %c0_6, %c0_7] : memref<2x1x32xf32, #tpu.memory_space<vmem>>, vector<2x1x32xf32>
    %c0_8 = arith.constant 0 : index
    %c0_9 = arith.constant 0 : index
    %c0_10 = arith.constant 0 : index
    %3 = vector.load %arg4[%c0_8, %c0_9, %c0_10] : memref<2x48x32xbf16, #tpu.memory_space<vmem>>, vector<2x48x32xbf16>
    %c0_11 = arith.constant 0 : index
    %c0_12 = arith.constant 0 : index
    %c0_13 = arith.constant 0 : index
    %4 = vector.load %arg5[%c0_11, %c0_12, %c0_13] : memref<2x1x32xf32, #tpu.memory_space<vmem>>, vector<2x1x32xf32>
    %c0_14 = arith.constant 0 : index
    %c0_15 = arith.constant 0 : index
    %c0_16 = arith.constant 0 : index
    %5 = vector.load %arg6[%c0_14, %c0_15, %c0_16] : memref<2x32x16xbf16, #tpu.memory_space<vmem>>, vector<2x32x16xbf16>
    %c0_17 = arith.constant 0 : index
    %c0_18 = arith.constant 0 : index
    %c0_19 = arith.constant 0 : index
    %6 = vector.load %arg7[%c0_17, %c0_18, %c0_19] : memref<2x1x16xf32, #tpu.memory_space<vmem>>, vector<2x1x16xf32>
    %7 = tpu.iota {dimensions = array<i32: 2>} : vector<2x8x16xi32>
    "tpu.trace_start"() <{level = 10 : i32, message = "sbk,skh->sbh"}> : () -> ()
    %cst = arith.constant dense<0.000000e+00> : vector<2x8x32xf32>
    %8 = tpu.matmul %0, %1, %cst {dimension_numbers = #tpu.dot_dimension_numbers<[2], [1], [1], [2], [0, 0, 0, 1, 1, 2], [0], [0]>} : vector<2x8x16xbf16>, vector<2x16x32xbf16>, vector<2x8x32xf32> -> vector<2x8x32xf32>
    "tpu.trace_stop"() : () -> ()
    %9 = vector.broadcast %2 : vector<2x1x32xf32> to vector<2x8x32xf32>
    %10 = arith.addf %8, %9 : vector<2x8x32xf32>
    %11 = math.tanh %10 : vector<2x8x32xf32>
    %12 = arith.truncf %11 : vector<2x8x32xf32> to vector<2x8x32xbf16>
    "tpu.trace_start"() <{level = 10 : i32, message = "sbk,skh->sbh"}> : () -> ()
    %cst_20 = arith.constant dense<0.000000e+00> : vector<2x8x16xf32>
    %13 = tpu.matmul %12, %5, %cst_20 {dimension_numbers = #tpu.dot_dimension_numbers<[2], [1], [1], [2], [0, 0, 0, 1, 1, 2], [0], [0]>} : vector<2x8x32xbf16>, vector<2x32x16xbf16>, vector<2x8x16xf32> -> vector<2x8x16xf32>
    "tpu.trace_stop"() : () -> ()
    %14 = vector.broadcast %6 : vector<2x1x16xf32> to vector<2x8x16xf32>
    %15 = arith.addf %13, %14 : vector<2x8x16xf32>
    %cst_21 = arith.constant dense<0xFF800000> : vector<2x8xf32>
    %16 = vector.multi_reduction <maximumf>, %15, %cst_21 [2] : vector<2x8x16xf32> to vector<2x8xf32>
    %17 = vector.shape_cast %16 : vector<2x8xf32> to vector<2x8x1xf32>
    %18 = vector.broadcast %17 : vector<2x8x1xf32> to vector<2x8x16xf32>
    %19 = arith.subf %15, %18 : vector<2x8x16xf32>
    %20 = math.exp %19 : vector<2x8x16xf32>
    %cst_22 = arith.constant dense<0.000000e+00> : vector<2x8xf32>
    %21 = vector.multi_reduction <add>, %20, %cst_22 [2] : vector<2x8x16xf32> to vector<2x8xf32>
    %22 = vector.shape_cast %21 : vector<2x8xf32> to vector<2x8x1xf32>
    %23 = math.log %22 : vector<2x8x1xf32>
    %24 = arith.addf %17, %23 : vector<2x8x1xf32>
    %25 = vector.broadcast %24 : vector<2x8x1xf32> to vector<2x8x16xf32>
    %26 = arith.subf %15, %25 : vector<2x8x16xf32>
    %27 = math.exp %26 : vector<2x8x16xf32>
    %28 = arith.mulf %27, %26 : vector<2x8x16xf32>
    %cst_23 = arith.constant dense<0.000000e+00> : vector<2x8xf32>
    %29 = vector.multi_reduction <add>, %28, %cst_23 [2] : vector<2x8x16xf32> to vector<2x8xf32>
    %30 = vector.shape_cast %29 : vector<2x8xf32> to vector<2x8x1xf32>
    %cst_24 = arith.constant 0.000000e+00 : f32
    %31 = vector.broadcast %cst_24 : f32 to vector<2x8x1xf32>
    %32 = arith.subf %31, %30 : vector<2x8x1xf32>
    %33 = arith.subf %17, %24 : vector<2x8x1xf32>
    %34 = vector.broadcast %17 : vector<2x8x1xf32> to vector<2x8x16xf32>
    %35 = arith.cmpf oeq, %15, %34 : vector<2x8x16xf32>
    %c16_i32 = arith.constant 16 : i32
    %36 = vector.broadcast %c16_i32 : i32 to vector<2x8x16xi32>
    %37 = arith.select %35, %7, %36 : vector<2x8x16xi1>, vector<2x8x16xi32>
    %cst_25 = arith.constant dense<2147483647> : vector<2x8xi32>
    %38 = vector.multi_reduction <minsi>, %37, %cst_25 [2] : vector<2x8x16xi32> to vector<2x8xi32>
    %39 = vector.shape_cast %38 : vector<2x8xi32> to vector<2x8x1xi32>
    %40 = arith.sitofp %39 : vector<2x8x1xi32> to vector<2x8x1xf32>
    %41 = vector.broadcast %39 : vector<2x8x1xi32> to vector<2x8x16xi32>
    %42 = arith.cmpi eq, %7, %41 : vector<2x8x16xi32>
    %cst_26 = arith.constant 1.000000e+00 : f32
    %cst_27 = arith.constant 0.000000e+00 : f32
    %43 = vector.broadcast %cst_26 : f32 to vector<2x8x16xf32>
    %44 = vector.broadcast %cst_27 : f32 to vector<2x8x16xf32>
    %45 = arith.select %42, %43, %44 : vector<2x8x16xi1>, vector<2x8x16xf32>
    %46 = arith.truncf %45 : vector<2x8x16xf32> to vector<2x8x16xbf16>
    %47 = arith.truncf %11 : vector<2x8x32xf32> to vector<2x8x32xbf16>
    %48 = tpu.concatenate %46, %47 in 2 : vector<2x8x16xbf16>, vector<2x8x32xbf16> -> vector<2x8x48xbf16>
    "tpu.trace_start"() <{level = 10 : i32, message = "sbk,skh->sbh"}> : () -> ()
    %cst_28 = arith.constant dense<0.000000e+00> : vector<2x8x32xf32>
    %49 = tpu.matmul %48, %3, %cst_28 {dimension_numbers = #tpu.dot_dimension_numbers<[2], [1], [1], [2], [0, 0, 0, 1, 1, 2], [0], [0]>} : vector<2x8x48xbf16>, vector<2x48x32xbf16>, vector<2x8x32xf32> -> vector<2x8x32xf32>
    "tpu.trace_stop"() : () -> ()
    %50 = vector.broadcast %4 : vector<2x1x32xf32> to vector<2x8x32xf32>
    %51 = arith.addf %49, %50 : vector<2x8x32xf32>
    %52 = math.tanh %51 : vector<2x8x32xf32>
    %53 = arith.truncf %52 : vector<2x8x32xf32> to vector<2x8x32xbf16>
    "tpu.trace_start"() <{level = 10 : i32, message = "sbk,skh->sbh"}> : () -> ()
    %cst_29 = arith.constant dense<0.000000e+00> : vector<2x8x16xf32>
    %54 = tpu.matmul %53, %5, %cst_29 {dimension_numbers = #tpu.dot_dimension_numbers<[2], [1], [1], [2], [0, 0, 0, 1, 1, 2], [0], [0]>} : vector<2x8x32xbf16>, vector<2x32x16xbf16>, vector<2x8x16xf32> -> vector<2x8x16xf32>
    "tpu.trace_stop"() : () -> ()
    %55 = vector.broadcast %6 : vector<2x1x16xf32> to vector<2x8x16xf32>
    %56 = arith.addf %54, %55 : vector<2x8x16xf32>
    %cst_30 = arith.constant dense<0xFF800000> : vector<2x8xf32>
    %57 = vector.multi_reduction <maximumf>, %56, %cst_30 [2] : vector<2x8x16xf32> to vector<2x8xf32>
    %58 = vector.shape_cast %57 : vector<2x8xf32> to vector<2x8x1xf32>
    %59 = vector.broadcast %58 : vector<2x8x1xf32> to vector<2x8x16xf32>
    %60 = arith.subf %56, %59 : vector<2x8x16xf32>
    %61 = math.exp %60 : vector<2x8x16xf32>
    %cst_31 = arith.constant dense<0.000000e+00> : vector<2x8xf32>
    %62 = vector.multi_reduction <add>, %61, %cst_31 [2] : vector<2x8x16xf32> to vector<2x8xf32>
    %63 = vector.shape_cast %62 : vector<2x8xf32> to vector<2x8x1xf32>
    %64 = math.log %63 : vector<2x8x1xf32>
    %65 = arith.addf %58, %64 : vector<2x8x1xf32>
    %66 = vector.broadcast %65 : vector<2x8x1xf32> to vector<2x8x16xf32>
    %67 = arith.subf %56, %66 : vector<2x8x16xf32>
    %68 = math.exp %67 : vector<2x8x16xf32>
    %69 = arith.mulf %68, %67 : vector<2x8x16xf32>
    %cst_32 = arith.constant dense<0.000000e+00> : vector<2x8xf32>
    %70 = vector.multi_reduction <add>, %69, %cst_32 [2] : vector<2x8x16xf32> to vector<2x8xf32>
    %71 = vector.shape_cast %70 : vector<2x8xf32> to vector<2x8x1xf32>
    %cst_33 = arith.constant 0.000000e+00 : f32
    %72 = vector.broadcast %cst_33 : f32 to vector<2x8x1xf32>
    %73 = arith.subf %72, %71 : vector<2x8x1xf32>
    %74 = arith.subf %58, %65 : vector<2x8x1xf32>
    %75 = vector.broadcast %58 : vector<2x8x1xf32> to vector<2x8x16xf32>
    %76 = arith.cmpf oeq, %56, %75 : vector<2x8x16xf32>
    %c16_i32_34 = arith.constant 16 : i32
    %77 = vector.broadcast %c16_i32_34 : i32 to vector<2x8x16xi32>
    %78 = arith.select %76, %7, %77 : vector<2x8x16xi1>, vector<2x8x16xi32>
    %cst_35 = arith.constant dense<2147483647> : vector<2x8xi32>
    %79 = vector.multi_reduction <minsi>, %78, %cst_35 [2] : vector<2x8x16xi32> to vector<2x8xi32>
    %80 = vector.shape_cast %79 : vector<2x8xi32> to vector<2x8x1xi32>
    %81 = arith.sitofp %80 : vector<2x8x1xi32> to vector<2x8x1xf32>
    %82 = vector.broadcast %80 : vector<2x8x1xi32> to vector<2x8x16xi32>
    %83 = arith.cmpi eq, %7, %82 : vector<2x8x16xi32>
    %cst_36 = arith.constant 1.000000e+00 : f32
    %cst_37 = arith.constant 0.000000e+00 : f32
    %84 = vector.broadcast %cst_36 : f32 to vector<2x8x16xf32>
    %85 = vector.broadcast %cst_37 : f32 to vector<2x8x16xf32>
    %86 = arith.select %83, %84, %85 : vector<2x8x16xi1>, vector<2x8x16xf32>
    %87 = arith.truncf %86 : vector<2x8x16xf32> to vector<2x8x16xbf16>
    %88 = arith.truncf %52 : vector<2x8x32xf32> to vector<2x8x32xbf16>
    %89 = tpu.concatenate %87, %88 in 2 : vector<2x8x16xbf16>, vector<2x8x32xbf16> -> vector<2x8x48xbf16>
    "tpu.trace_start"() <{level = 10 : i32, message = "sbk,skh->sbh"}> : () -> ()
    %cst_38 = arith.constant dense<0.000000e+00> : vector<2x8x32xf32>
    %90 = tpu.matmul %89, %3, %cst_38 {dimension_numbers = #tpu.dot_dimension_numbers<[2], [1], [1], [2], [0, 0, 0, 1, 1, 2], [0], [0]>} : vector<2x8x48xbf16>, vector<2x48x32xbf16>, vector<2x8x32xf32> -> vector<2x8x32xf32>
    "tpu.trace_stop"() : () -> ()
    %91 = vector.broadcast %4 : vector<2x1x32xf32> to vector<2x8x32xf32>
    %92 = arith.addf %90, %91 : vector<2x8x32xf32>
    %93 = math.tanh %92 : vector<2x8x32xf32>
    %94 = arith.truncf %93 : vector<2x8x32xf32> to vector<2x8x32xbf16>
    "tpu.trace_start"() <{level = 10 : i32, message = "sbk,skh->sbh"}> : () -> ()
    %cst_39 = arith.constant dense<0.000000e+00> : vector<2x8x16xf32>
    %95 = tpu.matmul %94, %5, %cst_39 {dimension_numbers = #tpu.dot_dimension_numbers<[2], [1], [1], [2], [0, 0, 0, 1, 1, 2], [0], [0]>} : vector<2x8x32xbf16>, vector<2x32x16xbf16>, vector<2x8x16xf32> -> vector<2x8x16xf32>
    "tpu.trace_stop"() : () -> ()
    %96 = vector.broadcast %6 : vector<2x1x16xf32> to vector<2x8x16xf32>
    %97 = arith.addf %95, %96 : vector<2x8x16xf32>
    %cst_40 = arith.constant dense<0xFF800000> : vector<2x8xf32>
    %98 = vector.multi_reduction <maximumf>, %97, %cst_40 [2] : vector<2x8x16xf32> to vector<2x8xf32>
    %99 = vector.shape_cast %98 : vector<2x8xf32> to vector<2x8x1xf32>
    %100 = vector.broadcast %99 : vector<2x8x1xf32> to vector<2x8x16xf32>
    %101 = arith.subf %97, %100 : vector<2x8x16xf32>
    %102 = math.exp %101 : vector<2x8x16xf32>
    %cst_41 = arith.constant dense<0.000000e+00> : vector<2x8xf32>
    %103 = vector.multi_reduction <add>, %102, %cst_41 [2] : vector<2x8x16xf32> to vector<2x8xf32>
    %104 = vector.shape_cast %103 : vector<2x8xf32> to vector<2x8x1xf32>
    %105 = math.log %104 : vector<2x8x1xf32>
    %106 = arith.addf %99, %105 : vector<2x8x1xf32>
    %107 = vector.broadcast %106 : vector<2x8x1xf32> to vector<2x8x16xf32>
    %108 = arith.subf %97, %107 : vector<2x8x16xf32>
    %109 = math.exp %108 : vector<2x8x16xf32>
    %110 = arith.mulf %109, %108 : vector<2x8x16xf32>
    %cst_42 = arith.constant dense<0.000000e+00> : vector<2x8xf32>
    %111 = vector.multi_reduction <add>, %110, %cst_42 [2] : vector<2x8x16xf32> to vector<2x8xf32>
    %112 = vector.shape_cast %111 : vector<2x8xf32> to vector<2x8x1xf32>
    %cst_43 = arith.constant 0.000000e+00 : f32
    %113 = vector.broadcast %cst_43 : f32 to vector<2x8x1xf32>
    %114 = arith.subf %113, %112 : vector<2x8x1xf32>
    %115 = arith.subf %99, %106 : vector<2x8x1xf32>
    %116 = vector.broadcast %99 : vector<2x8x1xf32> to vector<2x8x16xf32>
    %117 = arith.cmpf oeq, %97, %116 : vector<2x8x16xf32>
    %c16_i32_44 = arith.constant 16 : i32
    %118 = vector.broadcast %c16_i32_44 : i32 to vector<2x8x16xi32>
    %119 = arith.select %117, %7, %118 : vector<2x8x16xi1>, vector<2x8x16xi32>
    %cst_45 = arith.constant dense<2147483647> : vector<2x8xi32>
    %120 = vector.multi_reduction <minsi>, %119, %cst_45 [2] : vector<2x8x16xi32> to vector<2x8xi32>
    %121 = vector.shape_cast %120 : vector<2x8xi32> to vector<2x8x1xi32>
    %122 = arith.sitofp %121 : vector<2x8x1xi32> to vector<2x8x1xf32>
    %123 = vector.broadcast %121 : vector<2x8x1xi32> to vector<2x8x16xi32>
    %124 = arith.cmpi eq, %7, %123 : vector<2x8x16xi32>
    %cst_46 = arith.constant 1.000000e+00 : f32
    %cst_47 = arith.constant 0.000000e+00 : f32
    %125 = vector.broadcast %cst_46 : f32 to vector<2x8x16xf32>
    %126 = vector.broadcast %cst_47 : f32 to vector<2x8x16xf32>
    %127 = arith.select %124, %125, %126 : vector<2x8x16xi1>, vector<2x8x16xf32>
    %128 = arith.truncf %127 : vector<2x8x16xf32> to vector<2x8x16xbf16>
    %129 = arith.truncf %93 : vector<2x8x32xf32> to vector<2x8x32xbf16>
    %130 = tpu.concatenate %128, %129 in 2 : vector<2x8x16xbf16>, vector<2x8x32xbf16> -> vector<2x8x48xbf16>
    "tpu.trace_start"() <{level = 10 : i32, message = "sbk,skh->sbh"}> : () -> ()
    %cst_48 = arith.constant dense<0.000000e+00> : vector<2x8x32xf32>
    %131 = tpu.matmul %130, %3, %cst_48 {dimension_numbers = #tpu.dot_dimension_numbers<[2], [1], [1], [2], [0, 0, 0, 1, 1, 2], [0], [0]>} : vector<2x8x48xbf16>, vector<2x48x32xbf16>, vector<2x8x32xf32> -> vector<2x8x32xf32>
    "tpu.trace_stop"() : () -> ()
    %132 = vector.broadcast %4 : vector<2x1x32xf32> to vector<2x8x32xf32>
    %133 = arith.addf %131, %132 : vector<2x8x32xf32>
    %134 = math.tanh %133 : vector<2x8x32xf32>
    %135 = arith.truncf %134 : vector<2x8x32xf32> to vector<2x8x32xbf16>
    "tpu.trace_start"() <{level = 10 : i32, message = "sbk,skh->sbh"}> : () -> ()
    %cst_49 = arith.constant dense<0.000000e+00> : vector<2x8x16xf32>
    %136 = tpu.matmul %135, %5, %cst_49 {dimension_numbers = #tpu.dot_dimension_numbers<[2], [1], [1], [2], [0, 0, 0, 1, 1, 2], [0], [0]>} : vector<2x8x32xbf16>, vector<2x32x16xbf16>, vector<2x8x16xf32> -> vector<2x8x16xf32>
    "tpu.trace_stop"() : () -> ()
    %137 = vector.broadcast %6 : vector<2x1x16xf32> to vector<2x8x16xf32>
    %138 = arith.addf %136, %137 : vector<2x8x16xf32>
    %cst_50 = arith.constant dense<0xFF800000> : vector<2x8xf32>
    %139 = vector.multi_reduction <maximumf>, %138, %cst_50 [2] : vector<2x8x16xf32> to vector<2x8xf32>
    %140 = vector.shape_cast %139 : vector<2x8xf32> to vector<2x8x1xf32>
    %141 = vector.broadcast %140 : vector<2x8x1xf32> to vector<2x8x16xf32>
    %142 = arith.subf %138, %141 : vector<2x8x16xf32>
    %143 = math.exp %142 : vector<2x8x16xf32>
    %cst_51 = arith.constant dense<0.000000e+00> : vector<2x8xf32>
    %144 = vector.multi_reduction <add>, %143, %cst_51 [2] : vector<2x8x16xf32> to vector<2x8xf32>
    %145 = vector.shape_cast %144 : vector<2x8xf32> to vector<2x8x1xf32>
    %146 = math.log %145 : vector<2x8x1xf32>
    %147 = arith.addf %140, %146 : vector<2x8x1xf32>
    %148 = vector.broadcast %147 : vector<2x8x1xf32> to vector<2x8x16xf32>
    %149 = arith.subf %138, %148 : vector<2x8x16xf32>
    %150 = math.exp %149 : vector<2x8x16xf32>
    %151 = arith.mulf %150, %149 : vector<2x8x16xf32>
    %cst_52 = arith.constant dense<0.000000e+00> : vector<2x8xf32>
    %152 = vector.multi_reduction <add>, %151, %cst_52 [2] : vector<2x8x16xf32> to vector<2x8xf32>
    %153 = vector.shape_cast %152 : vector<2x8xf32> to vector<2x8x1xf32>
    %cst_53 = arith.constant 0.000000e+00 : f32
    %154 = vector.broadcast %cst_53 : f32 to vector<2x8x1xf32>
    %155 = arith.subf %154, %153 : vector<2x8x1xf32>
    %156 = arith.subf %140, %147 : vector<2x8x1xf32>
    %157 = vector.broadcast %140 : vector<2x8x1xf32> to vector<2x8x16xf32>
    %158 = arith.cmpf oeq, %138, %157 : vector<2x8x16xf32>
    %c16_i32_54 = arith.constant 16 : i32
    %159 = vector.broadcast %c16_i32_54 : i32 to vector<2x8x16xi32>
    %160 = arith.select %158, %7, %159 : vector<2x8x16xi1>, vector<2x8x16xi32>
    %cst_55 = arith.constant dense<2147483647> : vector<2x8xi32>
    %161 = vector.multi_reduction <minsi>, %160, %cst_55 [2] : vector<2x8x16xi32> to vector<2x8xi32>
    %162 = vector.shape_cast %161 : vector<2x8xi32> to vector<2x8x1xi32>
    %163 = arith.sitofp %162 : vector<2x8x1xi32> to vector<2x8x1xf32>
    %164 = vector.broadcast %162 : vector<2x8x1xi32> to vector<2x8x16xi32>
    %165 = arith.cmpi eq, %7, %164 : vector<2x8x16xi32>
    %cst_56 = arith.constant 1.000000e+00 : f32
    %cst_57 = arith.constant 0.000000e+00 : f32
    %166 = vector.broadcast %cst_56 : f32 to vector<2x8x16xf32>
    %167 = vector.broadcast %cst_57 : f32 to vector<2x8x16xf32>
    %168 = arith.select %165, %166, %167 : vector<2x8x16xi1>, vector<2x8x16xf32>
    %169 = arith.truncf %168 : vector<2x8x16xf32> to vector<2x8x16xbf16>
    %170 = arith.truncf %134 : vector<2x8x32xf32> to vector<2x8x32xbf16>
    %171 = tpu.concatenate %169, %170 in 2 : vector<2x8x16xbf16>, vector<2x8x32xbf16> -> vector<2x8x48xbf16>
    "tpu.trace_start"() <{level = 10 : i32, message = "sbk,skh->sbh"}> : () -> ()
    %cst_58 = arith.constant dense<0.000000e+00> : vector<2x8x32xf32>
    %172 = tpu.matmul %171, %3, %cst_58 {dimension_numbers = #tpu.dot_dimension_numbers<[2], [1], [1], [2], [0, 0, 0, 1, 1, 2], [0], [0]>} : vector<2x8x48xbf16>, vector<2x48x32xbf16>, vector<2x8x32xf32> -> vector<2x8x32xf32>
    "tpu.trace_stop"() : () -> ()
    %173 = vector.broadcast %4 : vector<2x1x32xf32> to vector<2x8x32xf32>
    %174 = arith.addf %172, %173 : vector<2x8x32xf32>
    %175 = math.tanh %174 : vector<2x8x32xf32>
    %176 = arith.truncf %175 : vector<2x8x32xf32> to vector<2x8x32xbf16>
    "tpu.trace_start"() <{level = 10 : i32, message = "sbk,skh->sbh"}> : () -> ()
    %cst_59 = arith.constant dense<0.000000e+00> : vector<2x8x16xf32>
    %177 = tpu.matmul %176, %5, %cst_59 {dimension_numbers = #tpu.dot_dimension_numbers<[2], [1], [1], [2], [0, 0, 0, 1, 1, 2], [0], [0]>} : vector<2x8x32xbf16>, vector<2x32x16xbf16>, vector<2x8x16xf32> -> vector<2x8x16xf32>
    "tpu.trace_stop"() : () -> ()
    %178 = vector.broadcast %6 : vector<2x1x16xf32> to vector<2x8x16xf32>
    %179 = arith.addf %177, %178 : vector<2x8x16xf32>
    %cst_60 = arith.constant dense<0xFF800000> : vector<2x8xf32>
    %180 = vector.multi_reduction <maximumf>, %179, %cst_60 [2] : vector<2x8x16xf32> to vector<2x8xf32>
    %181 = vector.shape_cast %180 : vector<2x8xf32> to vector<2x8x1xf32>
    %182 = vector.broadcast %181 : vector<2x8x1xf32> to vector<2x8x16xf32>
    %183 = arith.subf %179, %182 : vector<2x8x16xf32>
    %184 = math.exp %183 : vector<2x8x16xf32>
    %cst_61 = arith.constant dense<0.000000e+00> : vector<2x8xf32>
    %185 = vector.multi_reduction <add>, %184, %cst_61 [2] : vector<2x8x16xf32> to vector<2x8xf32>
    %186 = vector.shape_cast %185 : vector<2x8xf32> to vector<2x8x1xf32>
    %187 = math.log %186 : vector<2x8x1xf32>
    %188 = arith.addf %181, %187 : vector<2x8x1xf32>
    %189 = vector.broadcast %188 : vector<2x8x1xf32> to vector<2x8x16xf32>
    %190 = arith.subf %179, %189 : vector<2x8x16xf32>
    %191 = math.exp %190 : vector<2x8x16xf32>
    %192 = arith.mulf %191, %190 : vector<2x8x16xf32>
    %cst_62 = arith.constant dense<0.000000e+00> : vector<2x8xf32>
    %193 = vector.multi_reduction <add>, %192, %cst_62 [2] : vector<2x8x16xf32> to vector<2x8xf32>
    %194 = vector.shape_cast %193 : vector<2x8xf32> to vector<2x8x1xf32>
    %cst_63 = arith.constant 0.000000e+00 : f32
    %195 = vector.broadcast %cst_63 : f32 to vector<2x8x1xf32>
    %196 = arith.subf %195, %194 : vector<2x8x1xf32>
    %197 = arith.subf %181, %188 : vector<2x8x1xf32>
    %198 = vector.broadcast %181 : vector<2x8x1xf32> to vector<2x8x16xf32>
    %199 = arith.cmpf oeq, %179, %198 : vector<2x8x16xf32>
    %c16_i32_64 = arith.constant 16 : i32
    %200 = vector.broadcast %c16_i32_64 : i32 to vector<2x8x16xi32>
    %201 = arith.select %199, %7, %200 : vector<2x8x16xi1>, vector<2x8x16xi32>
    %cst_65 = arith.constant dense<2147483647> : vector<2x8xi32>
    %202 = vector.multi_reduction <minsi>, %201, %cst_65 [2] : vector<2x8x16xi32> to vector<2x8xi32>
    %203 = vector.shape_cast %202 : vector<2x8xi32> to vector<2x8x1xi32>
    %204 = arith.sitofp %203 : vector<2x8x1xi32> to vector<2x8x1xf32>
    %205 = vector.broadcast %203 : vector<2x8x1xi32> to vector<2x8x16xi32>
    %206 = arith.cmpi eq, %7, %205 : vector<2x8x16xi32>
    %cst_66 = arith.constant 1.000000e+00 : f32
    %cst_67 = arith.constant 0.000000e+00 : f32
    %207 = vector.broadcast %cst_66 : f32 to vector<2x8x16xf32>
    %208 = vector.broadcast %cst_67 : f32 to vector<2x8x16xf32>
    %209 = arith.select %206, %207, %208 : vector<2x8x16xi1>, vector<2x8x16xf32>
    %210 = arith.truncf %209 : vector<2x8x16xf32> to vector<2x8x16xbf16>
    %211 = arith.truncf %175 : vector<2x8x32xf32> to vector<2x8x32xbf16>
    %212 = tpu.concatenate %210, %211 in 2 : vector<2x8x16xbf16>, vector<2x8x32xbf16> -> vector<2x8x48xbf16>
    "tpu.trace_start"() <{level = 10 : i32, message = "sbk,skh->sbh"}> : () -> ()
    %cst_68 = arith.constant dense<0.000000e+00> : vector<2x8x32xf32>
    %213 = tpu.matmul %212, %3, %cst_68 {dimension_numbers = #tpu.dot_dimension_numbers<[2], [1], [1], [2], [0, 0, 0, 1, 1, 2], [0], [0]>} : vector<2x8x48xbf16>, vector<2x48x32xbf16>, vector<2x8x32xf32> -> vector<2x8x32xf32>
    "tpu.trace_stop"() : () -> ()
    %214 = vector.broadcast %4 : vector<2x1x32xf32> to vector<2x8x32xf32>
    %215 = arith.addf %213, %214 : vector<2x8x32xf32>
    %216 = math.tanh %215 : vector<2x8x32xf32>
    %217 = arith.truncf %216 : vector<2x8x32xf32> to vector<2x8x32xbf16>
    "tpu.trace_start"() <{level = 10 : i32, message = "sbk,skh->sbh"}> : () -> ()
    %cst_69 = arith.constant dense<0.000000e+00> : vector<2x8x16xf32>
    %218 = tpu.matmul %217, %5, %cst_69 {dimension_numbers = #tpu.dot_dimension_numbers<[2], [1], [1], [2], [0, 0, 0, 1, 1, 2], [0], [0]>} : vector<2x8x32xbf16>, vector<2x32x16xbf16>, vector<2x8x16xf32> -> vector<2x8x16xf32>
    "tpu.trace_stop"() : () -> ()
    %219 = vector.broadcast %6 : vector<2x1x16xf32> to vector<2x8x16xf32>
    %220 = arith.addf %218, %219 : vector<2x8x16xf32>
    %cst_70 = arith.constant dense<0xFF800000> : vector<2x8xf32>
    %221 = vector.multi_reduction <maximumf>, %220, %cst_70 [2] : vector<2x8x16xf32> to vector<2x8xf32>
    %222 = vector.shape_cast %221 : vector<2x8xf32> to vector<2x8x1xf32>
    %223 = vector.broadcast %222 : vector<2x8x1xf32> to vector<2x8x16xf32>
    %224 = arith.subf %220, %223 : vector<2x8x16xf32>
    %225 = math.exp %224 : vector<2x8x16xf32>
    %cst_71 = arith.constant dense<0.000000e+00> : vector<2x8xf32>
    %226 = vector.multi_reduction <add>, %225, %cst_71 [2] : vector<2x8x16xf32> to vector<2x8xf32>
    %227 = vector.shape_cast %226 : vector<2x8xf32> to vector<2x8x1xf32>
    %228 = math.log %227 : vector<2x8x1xf32>
    %229 = arith.addf %222, %228 : vector<2x8x1xf32>
    %230 = vector.broadcast %229 : vector<2x8x1xf32> to vector<2x8x16xf32>
    %231 = arith.subf %220, %230 : vector<2x8x16xf32>
    %232 = math.exp %231 : vector<2x8x16xf32>
    %233 = arith.mulf %232, %231 : vector<2x8x16xf32>
    %cst_72 = arith.constant dense<0.000000e+00> : vector<2x8xf32>
    %234 = vector.multi_reduction <add>, %233, %cst_72 [2] : vector<2x8x16xf32> to vector<2x8xf32>
    %235 = vector.shape_cast %234 : vector<2x8xf32> to vector<2x8x1xf32>
    %cst_73 = arith.constant 0.000000e+00 : f32
    %236 = vector.broadcast %cst_73 : f32 to vector<2x8x1xf32>
    %237 = arith.subf %236, %235 : vector<2x8x1xf32>
    %238 = arith.subf %222, %229 : vector<2x8x1xf32>
    %239 = vector.broadcast %222 : vector<2x8x1xf32> to vector<2x8x16xf32>
    %240 = arith.cmpf oeq, %220, %239 : vector<2x8x16xf32>
    %c16_i32_74 = arith.constant 16 : i32
    %241 = vector.broadcast %c16_i32_74 : i32 to vector<2x8x16xi32>
    %242 = arith.select %240, %7, %241 : vector<2x8x16xi1>, vector<2x8x16xi32>
    %cst_75 = arith.constant dense<2147483647> : vector<2x8xi32>
    %243 = vector.multi_reduction <minsi>, %242, %cst_75 [2] : vector<2x8x16xi32> to vector<2x8xi32>
    %244 = vector.shape_cast %243 : vector<2x8xi32> to vector<2x8x1xi32>
    %245 = arith.sitofp %244 : vector<2x8x1xi32> to vector<2x8x1xf32>
    %246 = vector.broadcast %244 : vector<2x8x1xi32> to vector<2x8x16xi32>
    %247 = arith.cmpi eq, %7, %246 : vector<2x8x16xi32>
    %cst_76 = arith.constant 1.000000e+00 : f32
    %cst_77 = arith.constant 0.000000e+00 : f32
    %248 = vector.broadcast %cst_76 : f32 to vector<2x8x16xf32>
    %249 = vector.broadcast %cst_77 : f32 to vector<2x8x16xf32>
    %250 = arith.select %247, %248, %249 : vector<2x8x16xi1>, vector<2x8x16xf32>
    %251 = arith.truncf %250 : vector<2x8x16xf32> to vector<2x8x16xbf16>
    %252 = arith.truncf %216 : vector<2x8x32xf32> to vector<2x8x32xbf16>
    %253 = tpu.concatenate %251, %252 in 2 : vector<2x8x16xbf16>, vector<2x8x32xbf16> -> vector<2x8x48xbf16>
    "tpu.trace_start"() <{level = 10 : i32, message = "sbk,skh->sbh"}> : () -> ()
    %cst_78 = arith.constant dense<0.000000e+00> : vector<2x8x32xf32>
    %254 = tpu.matmul %253, %3, %cst_78 {dimension_numbers = #tpu.dot_dimension_numbers<[2], [1], [1], [2], [0, 0, 0, 1, 1, 2], [0], [0]>} : vector<2x8x48xbf16>, vector<2x48x32xbf16>, vector<2x8x32xf32> -> vector<2x8x32xf32>
    "tpu.trace_stop"() : () -> ()
    %255 = vector.broadcast %4 : vector<2x1x32xf32> to vector<2x8x32xf32>
    %256 = arith.addf %254, %255 : vector<2x8x32xf32>
    %257 = math.tanh %256 : vector<2x8x32xf32>
    %258 = arith.truncf %257 : vector<2x8x32xf32> to vector<2x8x32xbf16>
    "tpu.trace_start"() <{level = 10 : i32, message = "sbk,skh->sbh"}> : () -> ()
    %cst_79 = arith.constant dense<0.000000e+00> : vector<2x8x16xf32>
    %259 = tpu.matmul %258, %5, %cst_79 {dimension_numbers = #tpu.dot_dimension_numbers<[2], [1], [1], [2], [0, 0, 0, 1, 1, 2], [0], [0]>} : vector<2x8x32xbf16>, vector<2x32x16xbf16>, vector<2x8x16xf32> -> vector<2x8x16xf32>
    "tpu.trace_stop"() : () -> ()
    %260 = vector.broadcast %6 : vector<2x1x16xf32> to vector<2x8x16xf32>
    %261 = arith.addf %259, %260 : vector<2x8x16xf32>
    %cst_80 = arith.constant dense<0xFF800000> : vector<2x8xf32>
    %262 = vector.multi_reduction <maximumf>, %261, %cst_80 [2] : vector<2x8x16xf32> to vector<2x8xf32>
    %263 = vector.shape_cast %262 : vector<2x8xf32> to vector<2x8x1xf32>
    %264 = vector.broadcast %263 : vector<2x8x1xf32> to vector<2x8x16xf32>
    %265 = arith.subf %261, %264 : vector<2x8x16xf32>
    %266 = math.exp %265 : vector<2x8x16xf32>
    %cst_81 = arith.constant dense<0.000000e+00> : vector<2x8xf32>
    %267 = vector.multi_reduction <add>, %266, %cst_81 [2] : vector<2x8x16xf32> to vector<2x8xf32>
    %268 = vector.shape_cast %267 : vector<2x8xf32> to vector<2x8x1xf32>
    %269 = math.log %268 : vector<2x8x1xf32>
    %270 = arith.addf %263, %269 : vector<2x8x1xf32>
    %271 = vector.broadcast %270 : vector<2x8x1xf32> to vector<2x8x16xf32>
    %272 = arith.subf %261, %271 : vector<2x8x16xf32>
    %273 = math.exp %272 : vector<2x8x16xf32>
    %274 = arith.mulf %273, %272 : vector<2x8x16xf32>
    %cst_82 = arith.constant dense<0.000000e+00> : vector<2x8xf32>
    %275 = vector.multi_reduction <add>, %274, %cst_82 [2] : vector<2x8x16xf32> to vector<2x8xf32>
    %276 = vector.shape_cast %275 : vector<2x8xf32> to vector<2x8x1xf32>
    %cst_83 = arith.constant 0.000000e+00 : f32
    %277 = vector.broadcast %cst_83 : f32 to vector<2x8x1xf32>
    %278 = arith.subf %277, %276 : vector<2x8x1xf32>
    %279 = arith.subf %263, %270 : vector<2x8x1xf32>
    %280 = vector.broadcast %263 : vector<2x8x1xf32> to vector<2x8x16xf32>
    %281 = arith.cmpf oeq, %261, %280 : vector<2x8x16xf32>
    %c16_i32_84 = arith.constant 16 : i32
    %282 = vector.broadcast %c16_i32_84 : i32 to vector<2x8x16xi32>
    %283 = arith.select %281, %7, %282 : vector<2x8x16xi1>, vector<2x8x16xi32>
    %cst_85 = arith.constant dense<2147483647> : vector<2x8xi32>
    %284 = vector.multi_reduction <minsi>, %283, %cst_85 [2] : vector<2x8x16xi32> to vector<2x8xi32>
    %285 = vector.shape_cast %284 : vector<2x8xi32> to vector<2x8x1xi32>
    %286 = arith.sitofp %285 : vector<2x8x1xi32> to vector<2x8x1xf32>
    %287 = vector.broadcast %285 : vector<2x8x1xi32> to vector<2x8x16xi32>
    %288 = arith.cmpi eq, %7, %287 : vector<2x8x16xi32>
    %cst_86 = arith.constant 1.000000e+00 : f32
    %cst_87 = arith.constant 0.000000e+00 : f32
    %289 = vector.broadcast %cst_86 : f32 to vector<2x8x16xf32>
    %290 = vector.broadcast %cst_87 : f32 to vector<2x8x16xf32>
    %291 = arith.select %288, %289, %290 : vector<2x8x16xi1>, vector<2x8x16xf32>
    %292 = arith.truncf %291 : vector<2x8x16xf32> to vector<2x8x16xbf16>
    %293 = arith.truncf %257 : vector<2x8x32xf32> to vector<2x8x32xbf16>
    %294 = tpu.concatenate %292, %293 in 2 : vector<2x8x16xbf16>, vector<2x8x32xbf16> -> vector<2x8x48xbf16>
    "tpu.trace_start"() <{level = 10 : i32, message = "sbk,skh->sbh"}> : () -> ()
    %cst_88 = arith.constant dense<0.000000e+00> : vector<2x8x32xf32>
    %295 = tpu.matmul %294, %3, %cst_88 {dimension_numbers = #tpu.dot_dimension_numbers<[2], [1], [1], [2], [0, 0, 0, 1, 1, 2], [0], [0]>} : vector<2x8x48xbf16>, vector<2x48x32xbf16>, vector<2x8x32xf32> -> vector<2x8x32xf32>
    "tpu.trace_stop"() : () -> ()
    %296 = vector.broadcast %4 : vector<2x1x32xf32> to vector<2x8x32xf32>
    %297 = arith.addf %295, %296 : vector<2x8x32xf32>
    %298 = math.tanh %297 : vector<2x8x32xf32>
    %299 = arith.truncf %298 : vector<2x8x32xf32> to vector<2x8x32xbf16>
    "tpu.trace_start"() <{level = 10 : i32, message = "sbk,skh->sbh"}> : () -> ()
    %cst_89 = arith.constant dense<0.000000e+00> : vector<2x8x16xf32>
    %300 = tpu.matmul %299, %5, %cst_89 {dimension_numbers = #tpu.dot_dimension_numbers<[2], [1], [1], [2], [0, 0, 0, 1, 1, 2], [0], [0]>} : vector<2x8x32xbf16>, vector<2x32x16xbf16>, vector<2x8x16xf32> -> vector<2x8x16xf32>
    "tpu.trace_stop"() : () -> ()
    %301 = vector.broadcast %6 : vector<2x1x16xf32> to vector<2x8x16xf32>
    %302 = arith.addf %300, %301 : vector<2x8x16xf32>
    %cst_90 = arith.constant dense<0xFF800000> : vector<2x8xf32>
    %303 = vector.multi_reduction <maximumf>, %302, %cst_90 [2] : vector<2x8x16xf32> to vector<2x8xf32>
    %304 = vector.shape_cast %303 : vector<2x8xf32> to vector<2x8x1xf32>
    %305 = vector.broadcast %304 : vector<2x8x1xf32> to vector<2x8x16xf32>
    %306 = arith.subf %302, %305 : vector<2x8x16xf32>
    %307 = math.exp %306 : vector<2x8x16xf32>
    %cst_91 = arith.constant dense<0.000000e+00> : vector<2x8xf32>
    %308 = vector.multi_reduction <add>, %307, %cst_91 [2] : vector<2x8x16xf32> to vector<2x8xf32>
    %309 = vector.shape_cast %308 : vector<2x8xf32> to vector<2x8x1xf32>
    %310 = math.log %309 : vector<2x8x1xf32>
    %311 = arith.addf %304, %310 : vector<2x8x1xf32>
    %312 = vector.broadcast %311 : vector<2x8x1xf32> to vector<2x8x16xf32>
    %313 = arith.subf %302, %312 : vector<2x8x16xf32>
    %314 = math.exp %313 : vector<2x8x16xf32>
    %315 = arith.mulf %314, %313 : vector<2x8x16xf32>
    %cst_92 = arith.constant dense<0.000000e+00> : vector<2x8xf32>
    %316 = vector.multi_reduction <add>, %315, %cst_92 [2] : vector<2x8x16xf32> to vector<2x8xf32>
    %317 = vector.shape_cast %316 : vector<2x8xf32> to vector<2x8x1xf32>
    %cst_93 = arith.constant 0.000000e+00 : f32
    %318 = vector.broadcast %cst_93 : f32 to vector<2x8x1xf32>
    %319 = arith.subf %318, %317 : vector<2x8x1xf32>
    %320 = arith.subf %304, %311 : vector<2x8x1xf32>
    %321 = vector.broadcast %304 : vector<2x8x1xf32> to vector<2x8x16xf32>
    %322 = arith.cmpf oeq, %302, %321 : vector<2x8x16xf32>
    %c16_i32_94 = arith.constant 16 : i32
    %323 = vector.broadcast %c16_i32_94 : i32 to vector<2x8x16xi32>
    %324 = arith.select %322, %7, %323 : vector<2x8x16xi1>, vector<2x8x16xi32>
    %cst_95 = arith.constant dense<2147483647> : vector<2x8xi32>
    %325 = vector.multi_reduction <minsi>, %324, %cst_95 [2] : vector<2x8x16xi32> to vector<2x8xi32>
    %326 = vector.shape_cast %325 : vector<2x8xi32> to vector<2x8x1xi32>
    %327 = arith.sitofp %326 : vector<2x8x1xi32> to vector<2x8x1xf32>
    %328 = tpu.concatenate %40, %81, %122, %163, %204, %245, %286, %327 in 2 : vector<2x8x1xf32>, vector<2x8x1xf32>, vector<2x8x1xf32>, vector<2x8x1xf32>, vector<2x8x1xf32>, vector<2x8x1xf32>, vector<2x8x1xf32>, vector<2x8x1xf32> -> vector<2x8x8xf32>
    %329 = tpu.concatenate %33, %74, %115, %156, %197, %238, %279, %320 in 2 : vector<2x8x1xf32>, vector<2x8x1xf32>, vector<2x8x1xf32>, vector<2x8x1xf32>, vector<2x8x1xf32>, vector<2x8x1xf32>, vector<2x8x1xf32>, vector<2x8x1xf32> -> vector<2x8x8xf32>
    %330 = tpu.concatenate %32, %73, %114, %155, %196, %237, %278, %319 in 2 : vector<2x8x1xf32>, vector<2x8x1xf32>, vector<2x8x1xf32>, vector<2x8x1xf32>, vector<2x8x1xf32>, vector<2x8x1xf32>, vector<2x8x1xf32>, vector<2x8x1xf32> -> vector<2x8x8xf32>
    %331 = tpu.concatenate %328, %329, %330 in 2 : vector<2x8x8xf32>, vector<2x8x8xf32>, vector<2x8x8xf32> -> vector<2x8x24xf32>
    %c0_96 = arith.constant 0 : index
    %c0_97 = arith.constant 0 : index
    %c0_98 = arith.constant 0 : index
    %332 = vector.load %arg8[%c0_96, %c0_97, %c0_98] : memref<2x8x24xf32, #tpu.memory_space<vmem>>, vector<2x8x24xf32>
    tpu.vector_store %arg8[%c0_96, %c0_97, %c0_98], %331 {strides = array<i32>} : memref<2x8x24xf32, #tpu.memory_space<vmem>>, vector<2x8x24xf32>,
    return
  }
  func.func @transform_0(%arg0: i32) -> (i32, i32, i32) {
    %c0_i32 = arith.constant 0 : i32
    %c0_i32_0 = arith.constant 0 : i32
    %c0_i32_1 = arith.constant 0 : i32
    %c0_i32_2 = arith.constant 0 : i32
    return %c0_i32, %c0_i32_0, %c0_i32_1 : i32, i32, i32
  }
  func.func @transform_1(%arg0: i32) -> (i32, i32, i32) {
    %c0_i32 = arith.constant 0 : i32
    %c0_i32_0 = arith.constant 0 : i32
    %c0_i32_1 = arith.constant 0 : i32
    %c0_i32_2 = arith.constant 0 : i32
    return %c0_i32, %c0_i32_0, %c0_i32_1 : i32, i32, i32
  }
  func.func @transform_2(%arg0: i32) -> (i32, i32, i32) {
    %c0_i32 = arith.constant 0 : i32
    %c0_i32_0 = arith.constant 0 : i32
    %c0_i32_1 = arith.constant 0 : i32
    %c0_i32_2 = arith.constant 0 : i32
    return %c0_i32, %c0_i32_0, %c0_i32_1 : i32, i32, i32
  }
  func.func @transform_3(%arg0: i32) -> (i32, i32, i32) {
    %c0_i32 = arith.constant 0 : i32
    %c0_i32_0 = arith.constant 0 : i32
    %c0_i32_1 = arith.constant 0 : i32
    %c0_i32_2 = arith.constant 0 : i32
    return %c0_i32, %c0_i32_0, %c0_i32_1 : i32, i32, i32
  }
  func.func @transform_4(%arg0: i32) -> (i32, i32, i32) {
    %c0_i32 = arith.constant 0 : i32
    %c0_i32_0 = arith.constant 0 : i32
    %c0_i32_1 = arith.constant 0 : i32
    %c0_i32_2 = arith.constant 0 : i32
    return %c0_i32, %c0_i32_0, %c0_i32_1 : i32, i32, i32
  }
  func.func @transform_5(%arg0: i32) -> (i32, i32, i32) {
    %c0_i32 = arith.constant 0 : i32
    %c0_i32_0 = arith.constant 0 : i32
    %c0_i32_1 = arith.constant 0 : i32
    %c0_i32_2 = arith.constant 0 : i32
    return %c0_i32, %c0_i32_0, %c0_i32_1 : i32, i32, i32
  }
  func.func @transform_6(%arg0: i32) -> (i32, i32, i32) {
    %c0_i32 = arith.constant 0 : i32
    %c0_i32_0 = arith.constant 0 : i32
    %c0_i32_1 = arith.constant 0 : i32
    %c0_i32_2 = arith.constant 0 : i32
    return %c0_i32, %c0_i32_0, %c0_i32_1 : i32, i32, i32
  }
  func.func @transform_7(%arg0: i32) -> (i32, i32, i32) {
    %c0_i32 = arith.constant 0 : i32
    %c0_i32_0 = arith.constant 0 : i32
    %c0_i32_1 = arith.constant 0 : i32
    %c0_i32_2 = arith.constant 0 : i32
    return %c0_i32, %c0_i32_0, %c0_i32_1 : i32, i32, i32
  }
}

</mosaic_0001>

<bundles_post_ra>
// kernel: tpu_custom_call.1
= control target key start
LH: loop header
LB: loop body
LE: loop exit
PB: predicated region body
PF: predicated region fallthrough
CT: control target
= control target key end

     0   :  { %v3028_v1 = vmov 0.0   ;;  %vm3029_vm0 = vmmov 0   ;;  %vm80_vm1 = vcmask 130048   ;;  %s4017_s0 = inlined_call_operand.vmem [shape: bf16[2,8,16], index: 0, kind: input, shape index: {}]   ;;  %s4018_s1 = inlined_call_operand.vmem [shape: bf16[2,16,32], index: 1, kind: input, shape index: {}]   ;;  %s4019_s2 = inlined_call_operand.vmem [shape: f32[2,1,32], index: 2, kind: input, shape index: {}]   ;;  %s4020_s3 = inlined_call_operand.vmem [shape: bf16[2,48,32], index: 3, kind: input, shape index: {}]   ;;  %s4021_s4 = inlined_call_operand.vmem [shape: f32[2,1,32], index: 4, kind: input, shape index: {}]   ;;  %s4022_s5 = inlined_call_operand.vmem [shape: bf16[2,32,16], index: 5, kind: input, shape index: {}]   ;;  %s4023_s6 = inlined_call_operand.vmem [shape: f32[2,1,16], index: 6, kind: input, shape index: {}]   ;;  %s4024_s7 = inlined_call_operand.hbm [shape: f32[2,8,24], index: 7, kind: output, shape index: {}]  }
   0x1   :  { %v2850_v0 = vld [vmem:[%s4018_s1] sm:$0xff]   ;;  %2564 = vmatprep.subr.bf16.mxu0 %v3028_v1  ;;  %2570 = vmatprep.subr.bf16.mxu1 %v3028_v1  ;;  %v2851_v2 = vld [vmem:[%s4018_s1 + $0x8] sm:$0xff]  }
   0x2   :  { %2565 = vmatpush3.bf16.msra.mxu0 %v2850_v0  ;;  %2566 = vmatprep.mubr.msk.bf16.mxu0 %vm3029_vm0, %v3028_v1  ;;  %v28_v3 = vld [vmem:[%s4017_s0] sm:$0xf]  ;;  %v29_v4 = vld [vmem:[%s4017_s0 + $0x4] sm:$0xf] }
   0x3   :  { %2571 = vmatpush3.bf16.msra.mxu1 %v2851_v2  ;;  %2572 = vmatprep.mubr.msk.bf16.mxu1 %vm3029_vm0, %v3028_v1 }
   0x4   :  { %2576 = vmatprep.subr.bf16.mxu0 %v3028_v1  ;;  %2584 = vmatprep.subr.bf16.mxu1 %v3028_v1 }
   0x5   :  { %2567 = vmatmul.mubr.msk.bf16.vlgmr.msra.gmra.mrb[0].mxu0 %vm80_vm1, %v28_v3 }
   0x6   :  { %2573 = vmatmul.mubr.msk.bf16.vlgmr.msra.gmra.mrb[0].mxu1 %vm80_vm1, %v29_v4  ;;  %2580 = vmatprep.mubr.msk.bf16.mxu0 %vm3029_vm0, %v3028_v1 }
   0x7   :  { %2588 = vmatprep.mubr.msk.bf16.mxu1 %vm3029_vm0, %v3028_v1 }
   0x8   :  { %12 = vsyncpa [#allocation3], 0  ;;  %v3103_v5 = vld [vmem:[%s4022_s5] sm:$0xff]   ;;  %v3108_v6 = vld [vmem:[%s4022_s5 + $0x10] sm:$0xff]   ;;  %vm201_vm2 = vcmask 261120   ;;  %v60_v39 = vlaneseq  ;;  %s3030_s1 = smov 16  }
   0x9   :  { %2577 = vmatpush3.bf16.msra.mxu0 %v3103_v5  ;;  %2585 = vmatpush3.bf16.msra.mxu1 %v3108_v6  ;;  %v3116_v7 = vld [vmem:[%s4022_s5 + $0x8] sm:$0xff]   ;;  %v3122_v8 = vld [vmem:[%s4022_s5 + $0x18] sm:$0xff]   ;;  %v2406_v9 = vld [vmem:[%s4019_s2] ss:$0 sm:$0xff]  ;;  %vm426_vm8 = vcmask 392192   ;;  %vm2317_vm14 = vcmask 7168  }
   0xa   :  { %2578 = vmatprep.subr.bf16.mxu0 %v3028_v1  ;;  %2586 = vmatprep.subr.bf16.mxu1 %v3028_v1  ;;  %v2407_v10 = vld [vmem:[%s4019_s2 + $0x1] ss:$0 sm:$0xff]  ;;  %v3146_v25 = vld [vmem:[%s4023_s6] ss:$0 sm:$0xff]  ;;  %v3163_v40 = vand.u32 127, %v60_v39  ;;  %v3187_v60 = vld [vmem:[%s4020_s3 + $0x8] sm:$0xff]  }
   0xb   :  { %v3151_v26 = vld [vmem:[%s4023_s6 + $0x1] ss:$0 sm:$0xff]  ;;  %v3192_v61 = vld [vmem:[%s4020_s3 + $0x18] sm:$0xff]   ;;  %v3201_v62 = vld [vmem:[%s4020_s3 + $0x10] sm:$0xff]  }
   0xc   :  { %v3180_v51 = vld [vmem:[%s4020_s3] sm:$0xff]   ;;  %v3217_v0 = vld [vmem:[%s4020_s3 + $0x28] sm:$0xff]  }
   0xd   :  { %2579 = vmatpush3.bf16.msra.mxu0 %v3116_v7  ;;  %2587 = vmatpush3.bf16.msra.mxu1 %v3122_v8  ;;  %v3206_v63 = vld [vmem:[%s4020_s3 + $0x20] sm:$0xff]  }
   0xe   :  { %2592 = vmatprep.subr.bf16.mxu0 %v3028_v1  ;;  %2602 = vmatprep.subr.bf16.mxu1 %v3028_v1 }
  0xd8   :  { %v118_v11 = vpop.f32.mrb[0].mxu0 }
  0xd9   :  { %v119_v12 = vadd.f32 %v2406_v9, %v118_v11  ;;  %v2568_v13 = vpop.f32.mrb[1].mxu0  ;;  %v167_v14 = vpop.f32.mrb[0].mxu1 }
  0xda   :  { %v168_v15 = vadd.f32 %v2407_v10, %v167_v14  ;;  %v121_v16 = vpop.f32.mrb[2].mxu0  ;;  %v2574_v17 = vpop.f32.mrb[1].mxu1 }
  0xdb   :  { %2862 = vtanh.f32 %v119_v12  ;;  %v2569_v18 = vpop.f32.mrb[3].mxu0  ;;  %v170_v19 = vpop.f32.mrb[2].mxu1 }
  0xdc   :  { %2864 = vtanh.f32 %v168_v15  ;;  %v2575_v20 = vpop.f32.mrb[3].mxu1 }
  0xe5   :  { %v2863_v21 = vpop.eup %2862 }
  0xe6   :  { %v2865_v22 = vpop.eup %2864  ;;  %v3134_v23 = vpack.c.bf16 %v2863_v21, %v2863_v21 }
  0xe7   :  { %v176_v24 = vpack.c.bf16 %v2865_v22, %v2865_v22 }
  0xe8   :  { %2581 = vmatmul.mubr.msk.bf16.vlgmr.msra.gmra.mrb[4].mxu0 %vm201_vm2, %v3134_v23 }
  0xe9   :  { %2589 = vmatmul.mubr.msk.bf16.vlgmr.msra.gmra.mrb[4].mxu1 %vm201_vm2, %v176_v24  ;;  %2598 = vmatprep.mubr.msk.bf16.mxu0 %vm3029_vm0, %v3028_v1 }
  0xea   :  { %2608 = vmatprep.mubr.msk.bf16.mxu1 %vm3029_vm0, %v3028_v1  ;;  %2593 = vmatpush3.bf16.msra.mxu0 %v3180_v51 }
  0xeb   :  { %2594 = vmatprep.subr.bf16.mxu0 %v3028_v1  ;;  %2603 = vmatpush3.bf16.msra.mxu1 %v3192_v61 }
  0xec   :  { %2604 = vmatprep.subr.bf16.mxu1 %v3028_v1 }
  0xee   :  { %2595 = vmatpush3.bf16.msra.mxu0 %v3187_v60 }
  0xef   :  { %2596 = vmatprep.subr.bf16.mxu0 %v3028_v1  ;;  %2605 = vmatpush3.bf16.msra.mxu1 %v3206_v63 }
  0xf0   :  { %2606 = vmatprep.subr.bf16.mxu1 %v3028_v1 }
  0xf2   :  { %2597 = vmatpush3.bf16.msra.mxu0 %v3201_v62 }
  0xf3   :  { %2612 = vmatprep.subr.bf16.mxu0 %v3028_v1  ;;  %2607 = vmatpush3.bf16.msra.mxu1 %v3217_v0 }
  0xf4   :  { %2620 = vmatprep.subr.bf16.mxu1 %v3028_v1 }
 0x1bb   :  { %v239_v27 = vpop.f32.mrb[4].mxu0 }
 0x1bc   :  { %v3154_v28 = vadd.f32 %v3146_v25, %v239_v27  ;;  %v2582_v29 = vpop.f32.mrb[5].mxu0  ;;  %v294_v30 = vpop.f32.mrb[4].mxu1 }
 0x1bd   :  { %v3157_v31 = vadd.f32 %v3151_v26, %v294_v30  ;;  %v242_v32 = vpop.f32.mrb[6].mxu0  ;;  %v2590_v33 = vpop.f32.mrb[5].mxu1 }
 0x1be   :  { %v2583_v34 = vpop.f32.mrb[7].mxu0  ;;  %v297_v35 = vpop.f32.mrb[6].mxu1  ;;  %v300_v36 = vsel %vm80_vm1, %v3154_v28, -inf  ;;  %v3257_v33 = vld [vmem:[%s4021_s4 + $0x1] ss:$0 sm:$0xff] }
 0x1bf   :  { %v2591_v37 = vpop.f32.mrb[7].mxu1  ;;  %301 = vmax.xlane.f32.xlu0 %v300_v36  ;;  %v303_v38 = vsel %vm80_vm1, %v3157_v31, -inf }
 0x1c3   :  { %304 = vmax.xlane.f32.xlu0 %v303_v38 }
 0x24c   :  { %v3165_v41 = vpop.xlane.xlu0 %301 }
 0x24d   :  { %vm342_vm3 = vcmp.eq.f32.partialorder %v3154_v28, %v3165_v41 }
 0x24e   :  { %v344_v42 = vsel %vm342_vm3, %v3163_v40, 16 }
 0x24f   :  { %v346_v43 = vsel %vm80_vm1, %v344_v42, 2147483647 }
 0x250   :  { %v3171_v44 = vpop.xlane.xlu0 %304  ;;  %v348_v45 = vshra.s32 %v346_v43, 16  ;;  %v347_v52 = vand.u32 65535, %v346_v43 }
 0x251   :  { %vm343_vm4 = vcmp.eq.f32.partialorder %v3157_v31, %v3171_v44 }
 0x252   :  { %v350_v46 = vcvt.s32.f32 %v348_v45  ;;  %v345_v47 = vsel %vm343_vm4, %v3163_v40, 16  ;;  %v349_v54 = vcvt.s32.f32 %v347_v52 }
 0x253   :  { %v361_v48 = vsel %vm80_vm1, %v345_v47, 2147483647 }
 0x254   :  { %351 = vmin.xlane.f32.xlu1 %v350_v46  ;;  %v363_v49 = vshra.s32 %v361_v48, 16  ;;  %v362_v55 = vand.u32 65535, %v361_v48 }
 0x256   :  { %v365_v50 = vcvt.s32.f32 %v363_v49  ;;  %v364_v58 = vcvt.s32.f32 %v362_v55 }
 0x258   :  { %366 = vmin.xlane.f32.xlu1 %v365_v50 }
 0x2e1   :  { %v352_v53 = vpop.xlane.xlu1 %351 }
 0x2e2   :  { %vm353_vm5 = vcmp.eq.f32.partialorder %v350_v46, %v352_v53  ;;  %v358_v2 = vcvt.f32.s32 %v352_v53 }
 0x2e3   :  { %v354_v56 = vsel %vm353_vm5, %v349_v54, inf }
 0x2e4   :  { %355 = vmin.xlane.f32.xlu0 %v354_v56  ;;  %v359_v4 = vshll.u32 %v358_v2, 16 }
 0x2e5   :  { %v367_v57 = vpop.xlane.xlu1 %366 }
 0x2e6   :  { %vm368_vm6 = vcmp.eq.f32.partialorder %v365_v50, %v367_v57  ;;  %v373_v9 = vcvt.f32.s32 %v367_v57 }
 0x2e7   :  { %v369_v59 = vsel %vm368_vm6, %v364_v58, inf }
 0x2e8   :  { %370 = vmin.xlane.f32.xlu1 %v369_v59  ;;  %v374_v13 = vshll.u32 %v373_v9, 16 }
 0x2f9   :  { %388 = vrot.lane.b32.xlu1 %v176_v24, %s3030_s1  ;;  %v3251_v24 = vld [vmem:[%s4021_s4] ss:$0 sm:$0xff] }
 0x2fa   :  { %386 = vrot.lane.b32.xlu0 %v3134_v23, %s3030_s1 }
 0x371   :  { %v356_v3 = vpop.xlane.xlu0 %355 }
 0x372   :  { %v357_v10 = vcvt.f32.s32 %v356_v3 }
 0x374   :  { %v3222_v11 = vadd.s32 %v359_v4, %v357_v10 }
 0x375   :  { %v371_v12 = vpop.xlane.xlu1 %370  ;;  %v387_v18 = vpop.permute.xlu0 %386 }
 0x376   :  { %vm378_vm7 = vcmp.eq.s32.totalorder %v3163_v40, %v3222_v11  ;;  %v372_v14 = vcvt.f32.s32 %v371_v12 }
 0x377   :  { %v380_v15 = vsel %vm378_vm7, 1.0, %v3028_v1 }
 0x378   :  { %v382_v16 = vpack.c.bf16 %v380_v15, %v380_v15  ;;  %v3227_v17 = vadd.s32 %v374_v13, %v372_v14 }
 0x379   :  { %v389_v22 = vpop.permute.xlu1 %388 }
 0x37a   :  { %vm379_vm9 = vcmp.eq.s32.totalorder %v3163_v40, %v3227_v17  ;;  %v392_v19 = vsel %vm80_vm1, %v382_v16, %v387_v18 }
 0x37b   :  { %v381_v20 = vsel %vm379_vm9, 1.0, %v3028_v1  ;;  %2599 = vmatmul.mubr.msk.bf16.vlgmr.msra.gmra.mrb[8].mxu0 %vm426_vm8, %v392_v19  ;;  %vm2320_vm9 = vcmask 15360  }
 0x37c   :  { %v383_v21 = vpack.c.bf16 %v381_v20, %v381_v20  ;;  %2613 = vmatpush3.bf16.msra.mxu0 %v3103_v5  ;;  %2616 = vmatprep.mubr.msk.bf16.mxu0 %vm3029_vm0, %v3028_v1 }
 0x37d   :  { %2614 = vmatprep.subr.bf16.mxu0 %v3028_v1 }
 0x37e   :  { %v395_v23 = vsel %vm80_vm1, %v383_v21, %v389_v22 }
 0x37f   :  { %2609 = vmatmul.mubr.msk.bf16.vlgmr.msra.gmra.mrb[8].mxu1 %vm426_vm8, %v395_v23 }
 0x380   :  { %2615 = vmatpush3.bf16.msra.mxu0 %v3116_v7  ;;  %2621 = vmatpush3.bf16.msra.mxu1 %v3108_v6 }
 0x381   :  { %2622 = vmatprep.subr.bf16.mxu1 %v3028_v1  ;;  %2624 = vmatprep.mubr.msk.bf16.mxu1 %vm3029_vm0, %v3028_v1 }
 0x382   :  { %2628 = vmatprep.subr.bf16.mxu0 %v3028_v1 }
 0x384   :  { %2623 = vmatpush3.bf16.msra.mxu1 %v3122_v8 }
 0x385   :  { %2638 = vmatprep.subr.bf16.mxu1 %v3028_v1 }
 0x44e   :  { %v463_v27 = vpop.f32.mrb[8].mxu0 }
 0x44f   :  { %v464_v29 = vadd.f32 %v3251_v24, %v463_v27  ;;  %v2600_v30 = vpop.f32.mrb[9].mxu0 }
 0x450   :  { %v466_v32 = vpop.f32.mrb[10].mxu0 }
 0x451   :  { %2866 = vtanh.f32 %v464_v29  ;;  %v2601_v34 = vpop.f32.mrb[11].mxu0 }
 0x452   :  { %v523_v35 = vpop.f32.mrb[8].mxu1 }
 0x453   :  { %v524_v36 = vadd.f32 %v3257_v33, %v523_v35  ;;  %v2610_v37 = vpop.f32.mrb[9].mxu1 }
 0x454   :  { %v526_v38 = vpop.f32.mrb[10].mxu1 }
 0x455   :  { %2868 = vtanh.f32 %v524_v36  ;;  %v2611_v39 = vpop.f32.mrb[11].mxu1  ;;  %v376_v38 = vcvt.s32.f32 %v3222_v11 }
 0x45b   :  { %v2867_v42 = vpop.eup %2866 }
 0x45c   :  { %v531_v43 = vpack.c.bf16 %v2867_v42, %v2867_v42 }
 0x45e   :  { %2617 = vmatmul.mubr.msk.bf16.vlgmr.msra.gmra.mrb[12].mxu0 %vm201_vm2, %v531_v43 }
 0x45f   :  { %v2869_v45 = vpop.eup %2868  ;;  %2629 = vmatpush3.bf16.msra.mxu0 %v3180_v51  ;;  %2634 = vmatprep.mubr.msk.bf16.mxu0 %vm3029_vm0, %v3028_v1 }
 0x460   :  { %v532_v46 = vpack.c.bf16 %v2869_v45, %v2869_v45  ;;  %2630 = vmatprep.subr.bf16.mxu0 %v3028_v1 }
 0x462   :  { %2625 = vmatmul.mubr.msk.bf16.vlgmr.msra.gmra.mrb[12].mxu1 %vm201_vm2, %v532_v46 }
 0x463   :  { %2631 = vmatpush3.bf16.msra.mxu0 %v3187_v60  ;;  %2639 = vmatpush3.bf16.msra.mxu1 %v3192_v61 }
 0x464   :  { %2632 = vmatprep.subr.bf16.mxu0 %v3028_v1  ;;  %2640 = vmatprep.subr.bf16.mxu1 %v3028_v1 }
 0x465   :  { %2644 = vmatprep.mubr.msk.bf16.mxu1 %vm3029_vm0, %v3028_v1 }
 0x467   :  { %2633 = vmatpush3.bf16.msra.mxu0 %v3201_v62  ;;  %2641 = vmatpush3.bf16.msra.mxu1 %v3206_v63 }
 0x468   :  { %2642 = vmatprep.subr.bf16.mxu1 %v3028_v1  ;;  %2648 = vmatprep.subr.bf16.mxu0 %v3028_v1 }
 0x46b   :  { %2643 = vmatpush3.bf16.msra.mxu1 %v3217_v0 }
 0x46c   :  { %2656 = vmatprep.subr.bf16.mxu1 %v3028_v1 }
 0x531   :  { %v570_v47 = vpop.f32.mrb[12].mxu0 }
 0x532   :  { %v3279_v48 = vadd.f32 %v3146_v25, %v570_v47  ;;  %v2618_v49 = vpop.f32.mrb[13].mxu0 }
 0x533   :  { %v573_v50 = vpop.f32.mrb[14].mxu0 }
 0x534   :  { %v2619_v52 = vpop.f32.mrb[15].mxu0  ;;  %v619_v53 = vsel %vm80_vm1, %v3279_v48, -inf }
 0x535   :  { %v613_v54 = vpop.f32.mrb[12].mxu1  ;;  %620 = vmax.xlane.f32.xlu1 %v619_v53  ;;  %v377_v53 = vcvt.s32.f32 %v3227_v17 }
 0x536   :  { %v3284_v55 = vadd.f32 %v3151_v26, %v613_v54  ;;  %v2626_v56 = vpop.f32.mrb[13].mxu1 }
 0x537   :  { %v616_v57 = vpop.f32.mrb[14].mxu1 }
 0x538   :  { %v2627_v58 = vpop.f32.mrb[15].mxu1  ;;  %v622_v59 = vsel %vm80_vm1, %v3284_v55, -inf }
 0x539   :  { %623 = vmax.xlane.f32.xlu0 %v622_v59 }
 0x5c2   :  { %v3288_v2 = vpop.xlane.xlu1 %620 }
 0x5c3   :  { %vm661_vm10 = vcmp.eq.f32.partialorder %v3279_v48, %v3288_v2 }
 0x5c4   :  { %v663_v3 = vsel %vm661_vm10, %v3163_v40, 16 }
 0x5c5   :  { %v665_v4 = vsel %vm80_vm1, %v663_v3, 2147483647 }
 0x5c6   :  { %v3294_v9 = vpop.xlane.xlu0 %623  ;;  %v667_v10 = vshra.s32 %v665_v4, 16  ;;  %v666_v18 = vand.u32 65535, %v665_v4 }
 0x5c7   :  { %vm662_vm11 = vcmp.eq.f32.partialorder %v3284_v55, %v3294_v9 }
 0x5c8   :  { %v669_v12 = vcvt.s32.f32 %v667_v10  ;;  %v664_v13 = vsel %vm662_vm11, %v3163_v40, 16  ;;  %v668_v20 = vcvt.s32.f32 %v666_v18 }
 0x5c9   :  { %v680_v14 = vsel %vm80_vm1, %v664_v13, 2147483647 }
 0x5ca   :  { %670 = vmin.xlane.f32.xlu0 %v669_v12  ;;  %v682_v15 = vshra.s32 %v680_v14, 16  ;;  %v681_v21 = vand.u32 65535, %v680_v14 }
 0x5cc   :  { %v684_v16 = vcvt.s32.f32 %v682_v15  ;;  %v683_v27 = vcvt.s32.f32 %v681_v21 }
 0x5ce   :  { %685 = vmin.xlane.f32.xlu1 %v684_v16 }
 0x657   :  { %v671_v19 = vpop.xlane.xlu0 %670 }
 0x658   :  { %vm672_vm12 = vcmp.eq.f32.partialorder %v669_v12, %v671_v19  ;;  %v677_v30 = vcvt.f32.s32 %v671_v19 }
 0x659   :  { %v673_v22 = vsel %vm672_vm12, %v668_v20, inf }
 0x65a   :  { %674 = vmin.xlane.f32.xlu0 %v673_v22  ;;  %v678_v34 = vshll.u32 %v677_v30, 16 }
 0x65b   :  { %v686_v23 = vpop.xlane.xlu1 %685 }
 0x65c   :  { %vm687_vm13 = vcmp.eq.f32.partialorder %v684_v16, %v686_v23  ;;  %v692_v35 = vcvt.f32.s32 %v686_v23 }
 0x65d   :  { %v688_v29 = vsel %vm687_vm13, %v683_v27, inf }
 0x65e   :  { %689 = vmin.xlane.f32.xlu1 %v688_v29  ;;  %v693_v42 = vshll.u32 %v692_v35, 16 }
 0x66f   :  { %707 = vrot.lane.b32.xlu1 %v532_v46, %s3030_s1 }
 0x670   :  { %705 = vrot.lane.b32.xlu0 %v531_v43, %s3030_s1 }
 0x6e7   :  { %v675_v32 = vpop.xlane.xlu0 %674 }
 0x6e8   :  { %v676_v36 = vcvt.f32.s32 %v675_v32 }
 0x6ea   :  { %v679_v37 = vadd.s32 %v678_v34, %v676_v36 }
 0x6eb   :  { %v690_v39 = vpop.xlane.xlu1 %689  ;;  %v706_v52 = vpop.permute.xlu0 %705 }
 0x6ec   :  { %v695_v45 = vcvt.s32.f32 %v679_v37  ;;  %vm697_vm15 = vcmp.eq.s32.totalorder %v3163_v40, %v679_v37  ;;  %v691_v47 = vcvt.f32.s32 %v690_v39 }
 0x6ed   :  { %v699_v49 = vsel %vm697_vm15, 1.0, %v3028_v1 }
 0x6ee   :  { %v701_v46 = vpack.c.bf16 %v699_v49, %v699_v49  ;;  %v3306_v43 = vsel %vm2317_vm14, %v376_v38, %v695_v45  ;;  %v694_v50 = vadd.s32 %v693_v42, %v691_v47 }
 0x6ef   :  { %v708_v59 = vpop.permute.xlu1 %707 }
 0x6f0   :  { %v711_v54 = vsel %vm80_vm1, %v701_v46, %v706_v52  ;;  %v696_v11 = vcvt.s32.f32 %v694_v50  ;;  %vm698_vm3 = vcmp.eq.s32.totalorder %v3163_v40, %v694_v50 }
 0x6f1   :  { %v700_v56 = vsel %vm698_vm3, 1.0, %v3028_v1  ;;  %2635 = vmatmul.mubr.msk.bf16.vlgmr.msra.gmra.mrb[16].mxu0 %vm426_vm8, %v711_v54 }
 0x6f2   :  { %v702_v57 = vpack.c.bf16 %v700_v56, %v700_v56  ;;  %v3314_v58 = vsel %vm2317_vm14, %v377_v53, %v696_v11  ;;  %2649 = vmatpush3.bf16.msra.mxu0 %v3103_v5  ;;  %2652 = vmatprep.mubr.msk.bf16.mxu0 %vm3029_vm0, %v3028_v1 }
 0x6f3   :  { %2650 = vmatprep.subr.bf16.mxu0 %v3028_v1 }
 0x6f4   :  { %v714_v17 = vsel %vm80_vm1, %v702_v57, %v708_v59 }
 0x6f5   :  { %2645 = vmatmul.mubr.msk.bf16.vlgmr.msra.gmra.mrb[16].mxu1 %vm426_vm8, %v714_v17 }
 0x6f6   :  { %2651 = vmatpush3.bf16.msra.mxu0 %v3116_v7  ;;  %2657 = vmatpush3.bf16.msra.mxu1 %v3108_v6 }
 0x6f7   :  { %2658 = vmatprep.subr.bf16.mxu1 %v3028_v1  ;;  %2660 = vmatprep.mubr.msk.bf16.mxu1 %vm3029_vm0, %v3028_v1 }
 0x6f8   :  { %2664 = vmatprep.subr.bf16.mxu0 %v3028_v1 }
 0x6fa   :  { %2659 = vmatpush3.bf16.msra.mxu1 %v3122_v8 }
 0x6fb   :  { %2674 = vmatprep.subr.bf16.mxu1 %v3028_v1 }
 0x7c4   :  { %v751_v3 = vpop.f32.mrb[16].mxu0 }
 0x7c5   :  { %v752_v4 = vadd.f32 %v3251_v24, %v751_v3  ;;  %v2636_v10 = vpop.f32.mrb[17].mxu0 }
 0x7c6   :  { %v754_v12 = vpop.f32.mrb[18].mxu0 }
 0x7c7   :  { %2870 = vtanh.f32 %v752_v4  ;;  %v2637_v13 = vpop.f32.mrb[19].mxu0 }
 0x7c8   :  { %v793_v14 = vpop.f32.mrb[16].mxu1 }
 0x7c9   :  { %v794_v15 = vadd.f32 %v3257_v33, %v793_v14  ;;  %v2646_v16 = vpop.f32.mrb[17].mxu1 }
 0x7ca   :  { %v796_v18 = vpop.f32.mrb[18].mxu1 }
 0x7cb   :  { %2872 = vtanh.f32 %v794_v15  ;;  %v2647_v19 = vpop.f32.mrb[19].mxu1 }
 0x7d1   :  { %v2871_v20 = vpop.eup %2870 }
 0x7d2   :  { %v801_v21 = vpack.c.bf16 %v2871_v20, %v2871_v20 }
 0x7d4   :  { %2653 = vmatmul.mubr.msk.bf16.vlgmr.msra.gmra.mrb[20].mxu0 %vm201_vm2, %v801_v21 }
 0x7d5   :  { %v2873_v22 = vpop.eup %2872  ;;  %2665 = vmatpush3.bf16.msra.mxu0 %v3180_v51  ;;  %2670 = vmatprep.mubr.msk.bf16.mxu0 %vm3029_vm0, %v3028_v1 }
 0x7d6   :  { %v802_v23 = vpack.c.bf16 %v2873_v22, %v2873_v22  ;;  %2666 = vmatprep.subr.bf16.mxu0 %v3028_v1 }
 0x7d8   :  { %2661 = vmatmul.mubr.msk.bf16.vlgmr.msra.gmra.mrb[20].mxu1 %vm201_vm2, %v802_v23 }
 0x7d9   :  { %2667 = vmatpush3.bf16.msra.mxu0 %v3187_v60  ;;  %2675 = vmatpush3.bf16.msra.mxu1 %v3192_v61 }
 0x7da   :  { %2668 = vmatprep.subr.bf16.mxu0 %v3028_v1  ;;  %2676 = vmatprep.subr.bf16.mxu1 %v3028_v1 }
 0x7db   :  { %2680 = vmatprep.mubr.msk.bf16.mxu1 %vm3029_vm0, %v3028_v1 }
 0x7dd   :  { %2669 = vmatpush3.bf16.msra.mxu0 %v3201_v62  ;;  %2677 = vmatpush3.bf16.msra.mxu1 %v3206_v63 }
 0x7de   :  { %2678 = vmatprep.subr.bf16.mxu1 %v3028_v1  ;;  %2684 = vmatprep.subr.bf16.mxu0 %v3028_v1 }
 0x7e1   :  { %2679 = vmatpush3.bf16.msra.mxu1 %v3217_v0 }
 0x7e2   :  { %2692 = vmatprep.subr.bf16.mxu1 %v3028_v1 }
 0x8a7   :  { %v840_v27 = vpop.f32.mrb[20].mxu0 }
 0x8a8   :  { %v3351_v29 = vadd.f32 %v3146_v25, %v840_v27  ;;  %v2654_v30 = vpop.f32.mrb[21].mxu0 }
 0x8a9   :  { %v843_v32 = vpop.f32.mrb[22].mxu0 }
 0x8aa   :  { %v2655_v34 = vpop.f32.mrb[23].mxu0  ;;  %v889_v35 = vsel %vm80_vm1, %v3351_v29, -inf }
 0x8ab   :  { %v883_v36 = vpop.f32.mrb[20].mxu1  ;;  %890 = vmax.xlane.f32.xlu1 %v889_v35 }
 0x8ac   :  { %v3356_v37 = vadd.f32 %v3151_v26, %v883_v36  ;;  %v2662_v38 = vpop.f32.mrb[21].mxu1 }
 0x8ad   :  { %v886_v39 = vpop.f32.mrb[22].mxu1 }
 0x8ae   :  { %v2663_v42 = vpop.f32.mrb[23].mxu1  ;;  %v892_v45 = vsel %vm80_vm1, %v3356_v37, -inf }
 0x8af   :  { %893 = vmax.xlane.f32.xlu0 %v892_v45 }
 0x938   :  { %v3360_v47 = vpop.xlane.xlu1 %890 }
 0x939   :  { %vm931_vm4 = vcmp.eq.f32.partialorder %v3351_v29, %v3360_v47 }
 0x93a   :  { %v933_v49 = vsel %vm931_vm4, %v3163_v40, 16  ;;  %vm2323_vm4 = vcmask 23552  }
 0x93b   :  { %v935_v46 = vsel %vm80_vm1, %v933_v49, 2147483647 }
 0x93c   :  { %v3366_v50 = vpop.xlane.xlu0 %893  ;;  %v937_v52 = vshra.s32 %v935_v46, 16  ;;  %v936_v59 = vand.u32 65535, %v935_v46 }
 0x93d   :  { %vm932_vm5 = vcmp.eq.f32.partialorder %v3356_v37, %v3366_v50 }
 0x93e   :  { %v939_v53 = vcvt.s32.f32 %v937_v52  ;;  %v934_v54 = vsel %vm932_vm5, %v3163_v40, 16  ;;  %v938_v3 = vcvt.s32.f32 %v936_v59 }
 0x93f   :  { %v950_v11 = vsel %vm80_vm1, %v934_v54, 2147483647 }
 0x940   :  { %940 = vmin.xlane.f32.xlu0 %v939_v53  ;;  %v952_v56 = vshra.s32 %v950_v11, 16  ;;  %v951_v4 = vand.u32 65535, %v950_v11 }
 0x942   :  { %v954_v57 = vcvt.s32.f32 %v952_v56  ;;  %v953_v13 = vcvt.s32.f32 %v951_v4 }
 0x944   :  { %955 = vmin.xlane.f32.xlu1 %v954_v57 }
 0x9cd   :  { %v941_v17 = vpop.xlane.xlu0 %940 }
 0x9ce   :  { %vm942_vm6 = vcmp.eq.f32.partialorder %v939_v53, %v941_v17  ;;  %v947_v15 = vcvt.f32.s32 %v941_v17 }
 0x9cf   :  { %v943_v10 = vsel %vm942_vm6, %v938_v3, inf }
 0x9d0   :  { %944 = vmin.xlane.f32.xlu0 %v943_v10  ;;  %v948_v18 = vshll.u32 %v947_v15, 16 }
 0x9d1   :  { %v956_v12 = vpop.xlane.xlu1 %955 }
 0x9d2   :  { %vm957_vm7 = vcmp.eq.f32.partialorder %v954_v57, %v956_v12  ;;  %v962_v19 = vcvt.f32.s32 %v956_v12 }
 0x9d3   :  { %v958_v14 = vsel %vm957_vm7, %v953_v13, inf }
 0x9d4   :  { %959 = vmin.xlane.f32.xlu1 %v958_v14  ;;  %v963_v30 = vshll.u32 %v962_v19, 16 }
 0x9e5   :  { %977 = vrot.lane.b32.xlu1 %v802_v23, %s3030_s1 }
 0x9e6   :  { %975 = vrot.lane.b32.xlu0 %v801_v21, %s3030_s1 }
 0xa5d   :  { %v945_v16 = vpop.xlane.xlu0 %944 }
 0xa5e   :  { %v946_v20 = vcvt.f32.s32 %v945_v16 }
 0xa60   :  { %v949_v22 = vadd.s32 %v948_v18, %v946_v20 }
 0xa61   :  { %v960_v27 = vpop.xlane.xlu1 %959  ;;  %v976_v38 = vpop.permute.xlu0 %975 }
 0xa62   :  { %v965_v32 = vcvt.s32.f32 %v949_v22  ;;  %vm967_vm10 = vcmp.eq.s32.totalorder %v3163_v40, %v949_v22  ;;  %v961_v34 = vcvt.f32.s32 %v960_v27 }
 0xa63   :  { %v969_v35 = vsel %vm967_vm10, 1.0, %v3028_v1 }
 0xa64   :  { %v971_v36 = vpack.c.bf16 %v969_v35, %v969_v35  ;;  %v3378_v23 = vsel %vm2320_vm9, %v3306_v43, %v965_v32  ;;  %v964_v21 = vadd.s32 %v963_v30, %v961_v34 }
 0xa65   :  { %v978_v43 = vpop.permute.xlu1 %977 }
 0xa66   :  { %v981_v39 = vsel %vm80_vm1, %v971_v36, %v976_v38  ;;  %v966_v42 = vcvt.s32.f32 %v964_v21  ;;  %vm968_vm11 = vcmp.eq.s32.totalorder %v3163_v40, %v964_v21 }
 0xa67   :  { %v970_v45 = vsel %vm968_vm11, 1.0, %v3028_v1  ;;  %2671 = vmatmul.mubr.msk.bf16.vlgmr.msra.gmra.mrb[24].mxu0 %vm426_vm8, %v981_v39 }
 0xa68   :  { %v972_v49 = vpack.c.bf16 %v970_v45, %v970_v45  ;;  %v3386_v46 = vsel %vm2320_vm9, %v3314_v58, %v966_v42  ;;  %2685 = vmatpush3.bf16.msra.mxu0 %v3103_v5  ;;  %2688 = vmatprep.mubr.msk.bf16.mxu0 %vm3029_vm0, %v3028_v1 }
 0xa69   :  { %2686 = vmatprep.subr.bf16.mxu0 %v3028_v1 }
 0xa6a   :  { %v984_v52 = vsel %vm80_vm1, %v972_v49, %v978_v43 }
 0xa6b   :  { %2681 = vmatmul.mubr.msk.bf16.vlgmr.msra.gmra.mrb[24].mxu1 %vm426_vm8, %v984_v52 }
 0xa6c   :  { %2687 = vmatpush3.bf16.msra.mxu0 %v3116_v7  ;;  %2693 = vmatpush3.bf16.msra.mxu1 %v3108_v6 }
 0xa6d   :  { %2694 = vmatprep.subr.bf16.mxu1 %v3028_v1  ;;  %2696 = vmatprep.mubr.msk.bf16.mxu1 %vm3029_vm0, %v3028_v1 }
 0xa6e   :  { %2700 = vmatprep.subr.bf16.mxu0 %v3028_v1 }
 0xa70   :  { %2695 = vmatpush3.bf16.msra.mxu1 %v3122_v8 }
 0xa71   :  { %2710 = vmatprep.subr.bf16.mxu1 %v3028_v1 }
 0xb3a   :  { %v1021_v58 = vpop.f32.mrb[24].mxu0 }
 0xb3b   :  { %v1022_v53 = vadd.f32 %v3251_v24, %v1021_v58  ;;  %v2672_v54 = vpop.f32.mrb[25].mxu0 }
 0xb3c   :  { %v1024_v11 = vpop.f32.mrb[26].mxu0 }
 0xb3d   :  { %2874 = vtanh.f32 %v1022_v53  ;;  %v2673_v56 = vpop.f32.mrb[27].mxu0 }
 0xb3e   :  { %v1063_v57 = vpop.f32.mrb[24].mxu1 }
 0xb3f   :  { %v1064_v59 = vadd.f32 %v3257_v33, %v1063_v57  ;;  %v2682_v17 = vpop.f32.mrb[25].mxu1 }
 0xb40   :  { %v1066_v3 = vpop.f32.mrb[26].mxu1 }
 0xb41   :  { %2876 = vtanh.f32 %v1064_v59  ;;  %v2683_v4 = vpop.f32.mrb[27].mxu1 }
 0xb47   :  { %v2875_v10 = vpop.eup %2874 }
 0xb48   :  { %v1071_v12 = vpack.c.bf16 %v2875_v10, %v2875_v10 }
 0xb4a   :  { %2689 = vmatmul.mubr.msk.bf16.vlgmr.msra.gmra.mrb[28].mxu0 %vm201_vm2, %v1071_v12 }
 0xb4b   :  { %v2877_v13 = vpop.eup %2876  ;;  %2701 = vmatpush3.bf16.msra.mxu0 %v3180_v51  ;;  %2706 = vmatprep.mubr.msk.bf16.mxu0 %vm3029_vm0, %v3028_v1 }
 0xb4c   :  { %v1072_v14 = vpack.c.bf16 %v2877_v13, %v2877_v13  ;;  %2702 = vmatprep.subr.bf16.mxu0 %v3028_v1 }
 0xb4e   :  { %2697 = vmatmul.mubr.msk.bf16.vlgmr.msra.gmra.mrb[28].mxu1 %vm201_vm2, %v1072_v14 }
 0xb4f   :  { %2703 = vmatpush3.bf16.msra.mxu0 %v3187_v60  ;;  %2711 = vmatpush3.bf16.msra.mxu1 %v3192_v61 }
 0xb50   :  { %2704 = vmatprep.subr.bf16.mxu0 %v3028_v1  ;;  %2712 = vmatprep.subr.bf16.mxu1 %v3028_v1 }
 0xb51   :  { %2716 = vmatprep.mubr.msk.bf16.mxu1 %vm3029_vm0, %v3028_v1 }
 0xb53   :  { %2705 = vmatpush3.bf16.msra.mxu0 %v3201_v62  ;;  %2713 = vmatpush3.bf16.msra.mxu1 %v3206_v63 }
 0xb54   :  { %2714 = vmatprep.subr.bf16.mxu1 %v3028_v1  ;;  %2720 = vmatprep.subr.bf16.mxu0 %v3028_v1 }
 0xb57   :  { %2715 = vmatpush3.bf16.msra.mxu1 %v3217_v0 }
 0xb58   :  { %2728 = vmatprep.subr.bf16.mxu1 %v3028_v1 }
 0xc1d   :  { %v1110_v15 = vpop.f32.mrb[28].mxu0 }
 0xc1e   :  { %v3423_v16 = vadd.f32 %v3146_v25, %v1110_v15  ;;  %v2690_v18 = vpop.f32.mrb[29].mxu0 }
 0xc1f   :  { %v1113_v19 = vpop.f32.mrb[30].mxu0 }
 0xc20   :  { %v2691_v20 = vpop.f32.mrb[31].mxu0  ;;  %v1159_v22 = vsel %vm80_vm1, %v3423_v16, -inf }
 0xc21   :  { %v1153_v27 = vpop.f32.mrb[28].mxu1  ;;  %1160 = vmax.xlane.f32.xlu1 %v1159_v22 }
 0xc22   :  { %v3428_v30 = vadd.f32 %v3151_v26, %v1153_v27  ;;  %v2698_v32 = vpop.f32.mrb[29].mxu1 }
 0xc23   :  { %v1156_v34 = vpop.f32.mrb[30].mxu1 }
 0xc24   :  { %v2699_v35 = vpop.f32.mrb[31].mxu1  ;;  %v1162_v36 = vsel %vm80_vm1, %v3428_v30, -inf }
 0xc25   :  { %1163 = vmax.xlane.f32.xlu0 %v1162_v36 }
 0xcae   :  { %v3432_v21 = vpop.xlane.xlu1 %1160 }
 0xcaf   :  { %vm1201_vm12 = vcmp.eq.f32.partialorder %v3423_v16, %v3432_v21 }
 0xcb0   :  { %v1203_v38 = vsel %vm1201_vm12, %v3163_v40, 16 }
 0xcb1   :  { %v1205_v39 = vsel %vm80_vm1, %v1203_v38, 2147483647 }
 0xcb2   :  { %v3438_v42 = vpop.xlane.xlu0 %1163  ;;  %v1207_v45 = vshra.s32 %v1205_v39, 16  ;;  %v1206_v54 = vand.u32 65535, %v1205_v39 }
 0xcb3   :  { %vm1202_vm13 = vcmp.eq.f32.partialorder %v3428_v30, %v3438_v42 }
 0xcb4   :  { %v1209_v49 = vcvt.s32.f32 %v1207_v45  ;;  %v1204_v43 = vsel %vm1202_vm13, %v3163_v40, 16  ;;  %v1208_v56 = vcvt.s32.f32 %v1206_v54  ;;  %vm2326_vm13 = vcmask 31744  }
 0xcb5   :  { %v1220_v52 = vsel %vm80_vm1, %v1204_v43, 2147483647 }
 0xcb6   :  { %1210 = vmin.xlane.f32.xlu0 %v1209_v49  ;;  %v1222_v58 = vshra.s32 %v1220_v52, 16  ;;  %v1221_v57 = vand.u32 65535, %v1220_v52 }
 0xcb8   :  { %v1224_v53 = vcvt.s32.f32 %v1222_v58  ;;  %v1223_v3 = vcvt.s32.f32 %v1221_v57 }
 0xcba   :  { %1225 = vmin.xlane.f32.xlu1 %v1224_v53 }
 0xd43   :  { %v1211_v11 = vpop.xlane.xlu0 %1210 }
 0xd44   :  { %vm1212_vm15 = vcmp.eq.f32.partialorder %v1209_v49, %v1211_v11  ;;  %v1217_v10 = vcvt.f32.s32 %v1211_v11 }
 0xd45   :  { %v1213_v59 = vsel %vm1212_vm15, %v1208_v56, inf }
 0xd46   :  { %1214 = vmin.xlane.f32.xlu0 %v1213_v59  ;;  %v1218_v15 = vshll.u32 %v1217_v10, 16 }
 0xd47   :  { %v1226_v17 = vpop.xlane.xlu1 %1225 }
 0xd48   :  { %vm1227_vm3 = vcmp.eq.f32.partialorder %v1224_v53, %v1226_v17  ;;  %v1232_v18 = vcvt.f32.s32 %v1226_v17 }
 0xd49   :  { %v1228_v4 = vsel %vm1227_vm3, %v1223_v3, inf }
 0xd4a   :  { %1229 = vmin.xlane.f32.xlu1 %v1228_v4  ;;  %v1233_v27 = vshll.u32 %v1232_v18, 16 }
 0xd5b   :  { %1247 = vrot.lane.b32.xlu1 %v1072_v14, %s3030_s1 }
 0xd5c   :  { %1245 = vrot.lane.b32.xlu0 %v1071_v12, %s3030_s1 }
 0xdd3   :  { %v1215_v13 = vpop.xlane.xlu0 %1214 }
 0xdd4   :  { %v1216_v19 = vcvt.f32.s32 %v1215_v13 }
 0xdd6   :  { %v1219_v20 = vadd.s32 %v1218_v15, %v1216_v19 }
 0xdd7   :  { %v1230_v22 = vpop.xlane.xlu1 %1229  ;;  %v1246_v38 = vpop.permute.xlu0 %1245 }
 0xdd8   :  { %v1235_v32 = vcvt.s32.f32 %v1219_v20  ;;  %vm1237_vm5 = vcmp.eq.s32.totalorder %v3163_v40, %v1219_v20  ;;  %v1231_v34 = vcvt.f32.s32 %v1230_v22 }
 0xdd9   :  { %v1239_v35 = vsel %vm1237_vm5, 1.0, %v3028_v1 }
 0xdda   :  { %v1241_v36 = vpack.c.bf16 %v1239_v35, %v1239_v35  ;;  %v3450_v14 = vsel %vm2323_vm4, %v3378_v23, %v1235_v32  ;;  %v1234_v12 = vadd.s32 %v1233_v27, %v1231_v34 }
 0xddb   :  { %v1248_v23 = vpop.permute.xlu1 %1247 }
 0xddc   :  { %v1251_v39 = vsel %vm80_vm1, %v1241_v36, %v1246_v38  ;;  %v1236_v45 = vcvt.s32.f32 %v1234_v12  ;;  %vm1238_vm6 = vcmp.eq.s32.totalorder %v3163_v40, %v1234_v12 }
 0xddd   :  { %v1240_v49 = vsel %vm1238_vm6, 1.0, %v3028_v1  ;;  %2707 = vmatmul.mubr.msk.bf16.vlgmr.msra.gmra.mrb[32].mxu0 %vm426_vm8, %v1251_v39 }
 0xdde   :  { %v1242_v43 = vpack.c.bf16 %v1240_v49, %v1240_v49  ;;  %v3458_v52 = vsel %vm2323_vm4, %v3386_v46, %v1236_v45  ;;  %2721 = vmatpush3.bf16.msra.mxu0 %v3103_v5  ;;  %2724 = vmatprep.mubr.msk.bf16.mxu0 %vm3029_vm0, %v3028_v1 }
 0xddf   :  { %2722 = vmatprep.subr.bf16.mxu0 %v3028_v1 }
 0xde0   :  { %v1254_v58 = vsel %vm80_vm1, %v1242_v43, %v1248_v23 }
 0xde1   :  { %2717 = vmatmul.mubr.msk.bf16.vlgmr.msra.gmra.mrb[32].mxu1 %vm426_vm8, %v1254_v58 }
 0xde2   :  { %2723 = vmatpush3.bf16.msra.mxu0 %v3116_v7  ;;  %2729 = vmatpush3.bf16.msra.mxu1 %v3108_v6 }
 0xde3   :  { %2730 = vmatprep.subr.bf16.mxu1 %v3028_v1  ;;  %2732 = vmatprep.mubr.msk.bf16.mxu1 %vm3029_vm0, %v3028_v1 }
 0xde4   :  { %2736 = vmatprep.subr.bf16.mxu0 %v3028_v1 }
 0xde6   :  { %2731 = vmatpush3.bf16.msra.mxu1 %v3122_v8 }
 0xde7   :  { %2746 = vmatprep.subr.bf16.mxu1 %v3028_v1 }
 0xeb0   :  { %v1291_v5 = vpop.f32.mrb[32].mxu0 }
 0xeb1   :  { %v1292_v46 = vadd.f32 %v3251_v24, %v1291_v5  ;;  %v2708_v53 = vpop.f32.mrb[33].mxu0 }
 0xeb2   :  { %v1294_v54 = vpop.f32.mrb[34].mxu0 }
 0xeb3   :  { %2878 = vtanh.f32 %v1292_v46  ;;  %v2709_v7 = vpop.f32.mrb[35].mxu0 }
 0xeb4   :  { %v1333_v11 = vpop.f32.mrb[32].mxu1 }
 0xeb5   :  { %v1334_v6 = vadd.f32 %v3257_v33, %v1333_v11  ;;  %v2718_v56 = vpop.f32.mrb[33].mxu1 }
 0xeb6   :  { %v1336_v57 = vpop.f32.mrb[34].mxu1 }
 0xeb7   :  { %2880 = vtanh.f32 %v1334_v6  ;;  %v2719_v59 = vpop.f32.mrb[35].mxu1 }
 0xebd   :  { %v2879_v17 = vpop.eup %2878 }
 0xebe   :  { %v1341_v3 = vpack.c.bf16 %v2879_v17, %v2879_v17 }
 0xec0   :  { %2725 = vmatmul.mubr.msk.bf16.vlgmr.msra.gmra.mrb[36].mxu0 %vm201_vm2, %v1341_v3 }
 0xec1   :  { %v2881_v8 = vpop.eup %2880  ;;  %2737 = vmatpush3.bf16.msra.mxu0 %v3180_v51  ;;  %2742 = vmatprep.mubr.msk.bf16.mxu0 %vm3029_vm0, %v3028_v1 }
 0xec2   :  { %v1342_v4 = vpack.c.bf16 %v2881_v8, %v2881_v8  ;;  %2738 = vmatprep.subr.bf16.mxu0 %v3028_v1 }
 0xec4   :  { %2733 = vmatmul.mubr.msk.bf16.vlgmr.msra.gmra.mrb[36].mxu1 %vm201_vm2, %v1342_v4 }
 0xec5   :  { %2739 = vmatpush3.bf16.msra.mxu0 %v3187_v60  ;;  %2747 = vmatpush3.bf16.msra.mxu1 %v3192_v61 }
 0xec6   :  { %2740 = vmatprep.subr.bf16.mxu0 %v3028_v1  ;;  %2748 = vmatprep.subr.bf16.mxu1 %v3028_v1 }
 0xec7   :  { %2752 = vmatprep.mubr.msk.bf16.mxu1 %vm3029_vm0, %v3028_v1 }
 0xec9   :  { %2741 = vmatpush3.bf16.msra.mxu0 %v3201_v62  ;;  %2749 = vmatpush3.bf16.msra.mxu1 %v3206_v63 }
 0xeca   :  { %2750 = vmatprep.subr.bf16.mxu1 %v3028_v1  ;;  %2756 = vmatprep.subr.bf16.mxu0 %v3028_v1 }
 0xecd   :  { %2751 = vmatpush3.bf16.msra.mxu1 %v3217_v0 }
 0xece   :  { %2764 = vmatprep.subr.bf16.mxu1 %v3028_v1 }
 0xf93   :  { %v1380_v51 = vpop.f32.mrb[36].mxu0 }
 0xf94   :  { %v3495_v60 = vadd.f32 %v3146_v25, %v1380_v51  ;;  %v2726_v61 = vpop.f32.mrb[37].mxu0 }
 0xf95   :  { %v1383_v10 = vpop.f32.mrb[38].mxu0 }
 0xf96   :  { %v2727_v13 = vpop.f32.mrb[39].mxu0  ;;  %v1429_v62 = vsel %vm80_vm1, %v3495_v60, -inf }
 0xf97   :  { %v1423_v15 = vpop.f32.mrb[36].mxu1  ;;  %1430 = vmax.xlane.f32.xlu1 %v1429_v62 }
 0xf98   :  { %v3500_v63 = vadd.f32 %v3151_v26, %v1423_v15  ;;  %v2734_v18 = vpop.f32.mrb[37].mxu1 }
 0xf99   :  { %v1426_v19 = vpop.f32.mrb[38].mxu1 }
 0xf9a   :  { %v2735_v0 = vpop.f32.mrb[39].mxu1  ;;  %v1432_v20 = vsel %vm80_vm1, %v3500_v63, -inf }
 0xf9b   :  { %1433 = vmax.xlane.f32.xlu0 %v1432_v20 }
0x1024   :  { %v3504_v25 = vpop.xlane.xlu1 %1430 }
0x1025   :  { %vm1471_vm7 = vcmp.eq.f32.partialorder %v3495_v60, %v3504_v25 }
0x1026   :  { %v1473_v22 = vsel %vm1471_vm7, %v3163_v40, 16 }
0x1027   :  { %v1475_v27 = vsel %vm80_vm1, %v1473_v22, 2147483647  ;;  %v3552_v22 = vld [vmem:[%s4022_s5 + $0x10] sm:$0xff]  }
0x1028   :  { %v3510_v32 = vpop.xlane.xlu0 %1433  ;;  %v1477_v26 = vshra.s32 %v1475_v27, 16  ;;  %v1476_v39 = vand.u32 65535, %v1475_v27  ;;  %v3562_v27 = vld [vmem:[%s4022_s5 + $0x18] sm:$0xff]  }
0x1029   :  { %vm1472_vm10 = vcmp.eq.f32.partialorder %v3500_v63, %v3510_v32 }
0x102a   :  { %v1479_v34 = vcvt.s32.f32 %v1477_v26  ;;  %v1474_v35 = vsel %vm1472_vm10, %v3163_v40, 16  ;;  %v1478_v49 = vcvt.s32.f32 %v1476_v39 }
0x102b   :  { %v1490_v36 = vsel %vm80_vm1, %v1474_v35, 2147483647 }
0x102c   :  { %1480 = vmin.xlane.f32.xlu0 %v1479_v34  ;;  %v1492_v12 = vshra.s32 %v1490_v36, 16  ;;  %v1491_v43 = vand.u32 65535, %v1490_v36 }
0x102e   :  { %v1494_v38 = vcvt.s32.f32 %v1492_v12  ;;  %v1493_v5 = vcvt.s32.f32 %v1491_v43 }
0x1030   :  { %1495 = vmin.xlane.f32.xlu1 %v1494_v38 }
0x10b9   :  { %v1481_v45 = vpop.xlane.xlu0 %1480 }
0x10ba   :  { %vm1482_vm11 = vcmp.eq.f32.partialorder %v1479_v34, %v1481_v45  ;;  %v1487_v53 = vcvt.f32.s32 %v1481_v45 }
0x10bb   :  { %v1483_v23 = vsel %vm1482_vm11, %v1478_v49, inf  ;;  %vm2329_vm11 = vcmask 39936  }
0x10bc   :  { %1484 = vmin.xlane.f32.xlu0 %v1483_v23  ;;  %v1488_v7 = vshll.u32 %v1487_v53, 16  ;;  %v3591_v53 = vld [vmem:[%s4020_s3 + $0x18] sm:$0xff]  }
0x10bd   :  { %v1496_v58 = vpop.xlane.xlu1 %1495 }
0x10be   :  { %vm1497_vm12 = vcmp.eq.f32.partialorder %v1494_v38, %v1496_v58  ;;  %v1502_v11 = vcvt.f32.s32 %v1496_v58 }
0x10bf   :  { %v1498_v46 = vsel %vm1497_vm12, %v1493_v5, inf }
0x10c0   :  { %1499 = vmin.xlane.f32.xlu1 %v1498_v46  ;;  %v1503_v59 = vshll.u32 %v1502_v11, 16  ;;  %v3585_v46 = vld [vmem:[%s4020_s3 + $0x8] sm:$0xff]  }
0x10c1   :  { %v3615_v11 = vld [vmem:[%s4020_s3 + $0x28] sm:$0xff]  }
0x10d1   :  { %1517 = vrot.lane.b32.xlu1 %v1342_v4, %s3030_s1 }
0x10d2   :  { %1515 = vrot.lane.b32.xlu0 %v1341_v3, %s3030_s1 }
0x1149   :  { %v1485_v54 = vpop.xlane.xlu0 %1484 }
0x114a   :  { %v1486_v6 = vcvt.f32.s32 %v1485_v54  ;;  %v3601_v54 = vld [vmem:[%s4020_s3 + $0x10] sm:$0xff]  }
0x114c   :  { %v1489_v56 = vadd.s32 %v1488_v7, %v1486_v6  ;;  %v3607_v7 = vld [vmem:[%s4020_s3 + $0x20] sm:$0xff]  }
0x114d   :  { %v1500_v57 = vpop.xlane.xlu1 %1499  ;;  %v1516_v10 = vpop.permute.xlu0 %1515 }
0x114e   :  { %v1505_v17 = vcvt.s32.f32 %v1489_v56  ;;  %vm1507_vm15 = vcmp.eq.s32.totalorder %v3163_v40, %v1489_v56  ;;  %v1501_v8 = vcvt.f32.s32 %v1500_v57  ;;  %v3622_v56 = vld [vmem:[%s4023_s6] ss:$0 sm:$0xff] }
0x114f   :  { %v1509_v51 = vsel %vm1507_vm15, 1.0, %v3028_v1 }
0x1150   :  { %v1511_v61 = vpack.c.bf16 %v1509_v51, %v1509_v51  ;;  %v3522_v4 = vsel %vm2326_vm13, %v3450_v14, %v1505_v17  ;;  %v1504_v3 = vadd.s32 %v1503_v59, %v1501_v8  ;;  %v3535_v14 = vld [vmem:[%s4022_s5] sm:$0xff]  }
0x1151   :  { %v1518_v0 = vpop.permute.xlu1 %1517 }
0x1152   :  { %v1521_v13 = vsel %vm80_vm1, %v1511_v61, %v1516_v10  ;;  %v1506_v62 = vcvt.s32.f32 %v1504_v3  ;;  %vm1508_vm3 = vcmp.eq.s32.totalorder %v3163_v40, %v1504_v3  ;;  %v3632_v3 = vld [vmem:[%s4023_s6 + $0x1] ss:$0 sm:$0xff] }
0x1153   :  { %v1510_v15 = vsel %vm1508_vm3, 1.0, %v3028_v1  ;;  %2743 = vmatmul.mubr.msk.bf16.vlgmr.msra.gmra.mrb[40].mxu0 %vm426_vm8, %v1521_v13 }
0x1154   :  { %v1512_v18 = vpack.c.bf16 %v1510_v15, %v1510_v15  ;;  %v3530_v19 = vsel %vm2326_vm13, %v3458_v52, %v1506_v62  ;;  %2757 = vmatpush3.bf16.msra.mxu0 %v3535_v14  ;;  %2760 = vmatprep.mubr.msk.bf16.mxu0 %vm3029_vm0, %v3028_v1  ;;  %v3546_v52 = vld [vmem:[%s4022_s5 + $0x8] sm:$0xff]  }
0x1155   :  { %2758 = vmatprep.subr.bf16.mxu0 %v3028_v1 }
0x1156   :  { %v1524_v20 = vsel %vm80_vm1, %v1512_v18, %v1518_v0 }
0x1157   :  { %2753 = vmatmul.mubr.msk.bf16.vlgmr.msra.gmra.mrb[40].mxu1 %vm426_vm8, %v1524_v20 }
0x1158   :  { %2759 = vmatpush3.bf16.msra.mxu0 %v3546_v52  ;;  %2765 = vmatpush3.bf16.msra.mxu1 %v3552_v22 }
0x1159   :  { %2766 = vmatprep.subr.bf16.mxu1 %v3028_v1  ;;  %2768 = vmatprep.mubr.msk.bf16.mxu1 %vm3029_vm0, %v3028_v1 }
0x115a   :  { %2772 = vmatprep.subr.bf16.mxu0 %v3028_v1 }
0x115c   :  { %2767 = vmatpush3.bf16.msra.mxu1 %v3562_v27 }
0x115d   :  { %2782 = vmatprep.subr.bf16.mxu1 %v3028_v1 }
0x1226   :  { %v1561_v26 = vpop.f32.mrb[40].mxu0 }
0x1227   :  { %v1562_v34 = vadd.f32 %v3251_v24, %v1561_v26  ;;  %v2744_v35 = vpop.f32.mrb[41].mxu0  ;;  %v3575_v24 = vld [vmem:[%s4020_s3] sm:$0xff]  }
0x1228   :  { %v1564_v36 = vpop.f32.mrb[42].mxu0 }
0x1229   :  { %2882 = vtanh.f32 %v1562_v34  ;;  %v2745_v12 = vpop.f32.mrb[43].mxu0 }
0x122a   :  { %v1603_v38 = vpop.f32.mrb[40].mxu1 }
0x122b   :  { %v1604_v39 = vadd.f32 %v3257_v33, %v1603_v38  ;;  %v2754_v45 = vpop.f32.mrb[41].mxu1 }
0x122c   :  { %v1606_v49 = vpop.f32.mrb[42].mxu1 }
0x122d   :  { %2884 = vtanh.f32 %v1604_v39  ;;  %v2755_v43 = vpop.f32.mrb[43].mxu1 }
0x1233   :  { %v2883_v23 = vpop.eup %2882 }
0x1234   :  { %v3568_v58 = vpack.c.bf16 %v2883_v23, %v2883_v23 }
0x1236   :  { %2761 = vmatmul.mubr.msk.bf16.vlgmr.msra.gmra.mrb[44].mxu0 %vm201_vm2, %v3568_v58 }
0x1237   :  { %v2885_v5 = vpop.eup %2884  ;;  %2773 = vmatpush3.bf16.msra.mxu0 %v3575_v24  ;;  %2778 = vmatprep.mubr.msk.bf16.mxu0 %vm3029_vm0, %v3028_v1 }
0x1238   :  { %v1612_v33 = vpack.c.bf16 %v2885_v5, %v2885_v5  ;;  %2774 = vmatprep.subr.bf16.mxu0 %v3028_v1 }
0x123a   :  { %2769 = vmatmul.mubr.msk.bf16.vlgmr.msra.gmra.mrb[44].mxu1 %vm201_vm2, %v1612_v33 }
0x123b   :  { %2775 = vmatpush3.bf16.msra.mxu0 %v3585_v46  ;;  %2783 = vmatpush3.bf16.msra.mxu1 %v3591_v53 }
0x123c   :  { %2776 = vmatprep.subr.bf16.mxu0 %v3028_v1  ;;  %2784 = vmatprep.subr.bf16.mxu1 %v3028_v1 }
0x123d   :  { %2788 = vmatprep.mubr.msk.bf16.mxu1 %vm3029_vm0, %v3028_v1 }
0x123f   :  { %2777 = vmatpush3.bf16.msra.mxu0 %v3601_v54  ;;  %2785 = vmatpush3.bf16.msra.mxu1 %v3607_v7 }
0x1240   :  { %2786 = vmatprep.subr.bf16.mxu1 %v3028_v1  ;;  %2792 = vmatprep.subr.bf16.mxu0 %v3028_v1 }
0x1243   :  { %2787 = vmatpush3.bf16.msra.mxu1 %v3615_v11 }
0x1244   :  { %2800 = vmatprep.subr.bf16.mxu1 %v3028_v1 }
0x1309   :  { %v1650_v6 = vpop.f32.mrb[44].mxu0 }
0x130a   :  { %v3625_v57 = vadd.f32 %v3622_v56, %v1650_v6  ;;  %v2762_v59 = vpop.f32.mrb[45].mxu0 }
0x130b   :  { %v1653_v17 = vpop.f32.mrb[46].mxu0 }
0x130c   :  { %v2763_v8 = vpop.f32.mrb[47].mxu0  ;;  %v1699_v51 = vsel %vm80_vm1, %v3625_v57, -inf }
0x130d   :  { %v1693_v61 = vpop.f32.mrb[44].mxu1  ;;  %1700 = vmax.xlane.f32.xlu1 %v1699_v51 }
0x130e   :  { %v3635_v10 = vadd.f32 %v3632_v3, %v1693_v61  ;;  %v2770_v13 = vpop.f32.mrb[45].mxu1 }
0x130f   :  { %v1696_v62 = vpop.f32.mrb[46].mxu1 }
0x1310   :  { %v2771_v15 = vpop.f32.mrb[47].mxu1  ;;  %v1702_v18 = vsel %vm80_vm1, %v3635_v10, -inf }
0x1311   :  { %1703 = vmax.xlane.f32.xlu0 %v1702_v18 }
0x139a   :  { %v3639_v0 = vpop.xlane.xlu1 %1700 }
0x139b   :  { %vm1741_vm5 = vcmp.eq.f32.partialorder %v3625_v57, %v3639_v0 }
0x139c   :  { %v1743_v20 = vsel %vm1741_vm5, %v3163_v40, 16 }
0x139d   :  { %v1745_v26 = vsel %vm80_vm1, %v1743_v20, 2147483647 }
0x139e   :  { %v3645_v34 = vpop.xlane.xlu0 %1703  ;;  %v1747_v35 = vshra.s32 %v1745_v26, 16  ;;  %v1746_v49 = vand.u32 65535, %v1745_v26 }
0x139f   :  { %vm1742_vm6 = vcmp.eq.f32.partialorder %v3635_v10, %v3645_v34 }
0x13a0   :  { %v1749_v36 = vcvt.s32.f32 %v1747_v35  ;;  %v1744_v12 = vsel %vm1742_vm6, %v3163_v40, 16  ;;  %v1748_v23 = vcvt.s32.f32 %v1746_v49 }
0x13a1   :  { %v1760_v38 = vsel %vm80_vm1, %v1744_v12, 2147483647 }
0x13a2   :  { %1750 = vmin.xlane.f32.xlu0 %v1749_v36  ;;  %v1762_v39 = vshra.s32 %v1760_v38, 16  ;;  %v1761_v5 = vand.u32 65535, %v1760_v38 }
0x13a4   :  { %v1764_v45 = vcvt.s32.f32 %v1762_v39  ;;  %v1763_v17 = vcvt.s32.f32 %v1761_v5 }
0x13a6   :  { %1765 = vmin.xlane.f32.xlu1 %v1764_v45 }
0x142f   :  { %v1751_v43 = vpop.xlane.xlu0 %1750 }
0x1430   :  { %vm1752_vm7 = vcmp.eq.f32.partialorder %v1749_v36, %v1751_v43  ;;  %v1757_v51 = vcvt.f32.s32 %v1751_v43 }
0x1431   :  { %v1753_v6 = vsel %vm1752_vm7, %v1748_v23, inf }
0x1432   :  { %1754 = vmin.xlane.f32.xlu0 %v1753_v6  ;;  %v1758_v13 = vshll.u32 %v1757_v51, 16 }
0x1433   :  { %v1766_v59 = vpop.xlane.xlu1 %1765 }
0x1434   :  { %vm1767_vm10 = vcmp.eq.f32.partialorder %v1764_v45, %v1766_v59  ;;  %v1772_v62 = vcvt.f32.s32 %v1766_v59  ;;  %v3685_v59 = vld [vmem:[%s4021_s4] ss:$0 sm:$0xff] }
0x1435   :  { %v1768_v8 = vsel %vm1767_vm10, %v1763_v17, inf  ;;  %vm2332_vm10 = vcmask 48128  }
0x1436   :  { %1769 = vmin.xlane.f32.xlu1 %v1768_v8  ;;  %v1773_v26 = vshll.u32 %v1772_v62, 16  ;;  %v3691_v62 = vld [vmem:[%s4021_s4 + $0x1] ss:$0 sm:$0xff]  ;;  %s3031_s4 = smov 8  }
0x1447   :  { %1787 = vrot.lane.b32.xlu1 %v1612_v33, %s3030_s1 }
0x1448   :  { %1785 = vrot.lane.b32.xlu0 %v3568_v58, %s3030_s1 }
0x14bf   :  { %v1755_v61 = vpop.xlane.xlu0 %1754 }
0x14c0   :  { %v1756_v15 = vcvt.f32.s32 %v1755_v61 }
0x14c2   :  { %v1759_v18 = vadd.s32 %v1758_v13, %v1756_v15 }
0x14c3   :  { %v1770_v20 = vpop.xlane.xlu1 %1769  ;;  %v1786_v39 = vpop.permute.xlu0 %1785 }
0x14c4   :  { %v1775_v35 = vcvt.s32.f32 %v1759_v18  ;;  %vm1777_vm12 = vcmp.eq.s32.totalorder %v3163_v40, %v1759_v18  ;;  %v1771_v36 = vcvt.f32.s32 %v1770_v20 }
0x14c5   :  { %v1779_v12 = vsel %vm1777_vm12, 1.0, %v3028_v1 }
0x14c6   :  { %v1781_v38 = vpack.c.bf16 %v1779_v12, %v1779_v12  ;;  %v1774_v33 = vadd.s32 %v1773_v26, %v1771_v36  ;;  %v3658_v58 = vsel %vm2329_vm11, %v3522_v4, %v1775_v35 }
0x14c7   :  { %v1788_v5 = vpop.permute.xlu1 %1787 }
0x14c8   :  { %v1791_v45 = vsel %vm80_vm1, %v1781_v38, %v1786_v39  ;;  %v1776_v49 = vcvt.s32.f32 %v1774_v33  ;;  %vm1778_vm15 = vcmp.eq.s32.totalorder %v3163_v40, %v1774_v33 }
0x14c9   :  { %v1780_v43 = vsel %vm1778_vm15, 1.0, %v3028_v1  ;;  %2779 = vmatmul.mubr.msk.bf16.vlgmr.msra.gmra.mrb[48].mxu0 %vm426_vm8, %v1791_v45 }
0x14ca   :  { %v1782_v23 = vpack.c.bf16 %v1780_v43, %v1780_v43  ;;  %2793 = vmatpush3.bf16.msra.mxu0 %v3535_v14  ;;  %2796 = vmatprep.mubr.msk.bf16.mxu0 %vm3029_vm0, %v3028_v1  ;;  %v3669_v4 = vsel %vm2329_vm11, %v3530_v19, %v1776_v49 }
0x14cb   :  { %2794 = vmatprep.subr.bf16.mxu0 %v3028_v1 }
0x14cc   :  { %v1794_v6 = vsel %vm80_vm1, %v1782_v23, %v1788_v5 }
0x14cd   :  { %2789 = vmatmul.mubr.msk.bf16.vlgmr.msra.gmra.mrb[48].mxu1 %vm426_vm8, %v1794_v6 }
0x14ce   :  { %2795 = vmatpush3.bf16.msra.mxu0 %v3546_v52  ;;  %2801 = vmatpush3.bf16.msra.mxu1 %v3552_v22 }
0x14cf   :  { %2802 = vmatprep.subr.bf16.mxu1 %v3028_v1  ;;  %2804 = vmatprep.mubr.msk.bf16.mxu1 %vm3029_vm0, %v3028_v1 }
0x14d0   :  { %2808 = vmatprep.subr.bf16.mxu0 %v3028_v1 }
0x14d2   :  { %2803 = vmatpush3.bf16.msra.mxu1 %v3562_v27 }
0x14d3   :  { %2818 = vmatprep.subr.bf16.mxu1 %v3028_v1 }
0x159c   :  { %v1831_v19 = vpop.f32.mrb[48].mxu0 }
0x159d   :  { %v1832_v17 = vadd.f32 %v3685_v59, %v1831_v19  ;;  %v2780_v8 = vpop.f32.mrb[49].mxu0 }
0x159e   :  { %v1834_v51 = vpop.f32.mrb[50].mxu0 }
0x159f   :  { %2886 = vtanh.f32 %v1832_v17  ;;  %v2781_v61 = vpop.f32.mrb[51].mxu0 }
0x15a0   :  { %v1873_v13 = vpop.f32.mrb[48].mxu1 }
0x15a1   :  { %v1874_v15 = vadd.f32 %v3691_v62, %v1873_v13  ;;  %v2790_v18 = vpop.f32.mrb[49].mxu1 }
0x15a2   :  { %v1876_v20 = vpop.f32.mrb[50].mxu1 }
0x15a3   :  { %2888 = vtanh.f32 %v1874_v15  ;;  %v2791_v26 = vpop.f32.mrb[51].mxu1 }
0x15a9   :  { %v2887_v35 = vpop.eup %2886 }
0x15aa   :  { %v1881_v36 = vpack.c.bf16 %v2887_v35, %v2887_v35 }
0x15ac   :  { %2797 = vmatmul.mubr.msk.bf16.vlgmr.msra.gmra.mrb[52].mxu0 %vm201_vm2, %v1881_v36 }
0x15ad   :  { %v2889_v12 = vpop.eup %2888  ;;  %2809 = vmatpush3.bf16.msra.mxu0 %v3575_v24  ;;  %2814 = vmatprep.mubr.msk.bf16.mxu0 %vm3029_vm0, %v3028_v1 }
0x15ae   :  { %v1882_v38 = vpack.c.bf16 %v2889_v12, %v2889_v12  ;;  %2810 = vmatprep.subr.bf16.mxu0 %v3028_v1 }
0x15b0   :  { %2805 = vmatmul.mubr.msk.bf16.vlgmr.msra.gmra.mrb[52].mxu1 %vm201_vm2, %v1882_v38 }
0x15b1   :  { %2811 = vmatpush3.bf16.msra.mxu0 %v3585_v46  ;;  %2819 = vmatpush3.bf16.msra.mxu1 %v3591_v53 }
0x15b2   :  { %2812 = vmatprep.subr.bf16.mxu0 %v3028_v1  ;;  %2820 = vmatprep.subr.bf16.mxu1 %v3028_v1 }
0x15b3   :  { %2824 = vmatprep.mubr.msk.bf16.mxu1 %vm3029_vm0, %v3028_v1 }
0x15b5   :  { %2813 = vmatpush3.bf16.msra.mxu0 %v3601_v54  ;;  %2821 = vmatpush3.bf16.msra.mxu1 %v3607_v7 }
0x15b6   :  { %2822 = vmatprep.subr.bf16.mxu1 %v3028_v1  ;;  %2828 = vmatprep.subr.bf16.mxu0 %v3028_v1 }
0x15b9   :  { %2823 = vmatpush3.bf16.msra.mxu1 %v3615_v11 }
0x15ba   :  { %2836 = vmatprep.subr.bf16.mxu1 %v3028_v1 }
0x167f   :  { %v1920_v24 = vpop.f32.mrb[52].mxu0 }
0x1680   :  { %v3713_v46 = vadd.f32 %v3622_v56, %v1920_v24  ;;  %v2798_v53 = vpop.f32.mrb[53].mxu0 }
0x1681   :  { %v1923_v33 = vpop.f32.mrb[54].mxu0 }
0x1682   :  { %v2799_v39 = vpop.f32.mrb[55].mxu0  ;;  %v1969_v54 = vsel %vm80_vm1, %v3713_v46, -inf }
0x1683   :  { %v1963_v45 = vpop.f32.mrb[52].mxu1  ;;  %1970 = vmax.xlane.f32.xlu1 %v1969_v54 }
0x1684   :  { %v3718_v7 = vadd.f32 %v3632_v3, %v1963_v45  ;;  %v2806_v49 = vpop.f32.mrb[53].mxu1 }
0x1685   :  { %v1966_v43 = vpop.f32.mrb[54].mxu1 }
0x1686   :  { %v2807_v11 = vpop.f32.mrb[55].mxu1  ;;  %v1972_v23 = vsel %vm80_vm1, %v3718_v7, -inf }
0x1687   :  { %1973 = vmax.xlane.f32.xlu0 %v1972_v23 }
0x1710   :  { %v3722_v5 = vpop.xlane.xlu1 %1970 }
0x1711   :  { %vm2011_vm3 = vcmp.eq.f32.partialorder %v3713_v46, %v3722_v5 }
0x1712   :  { %v2013_v6 = vsel %vm2011_vm3, %v3163_v40, 16 }
0x1713   :  { %v2015_v19 = vsel %vm80_vm1, %v2013_v6, 2147483647 }
0x1714   :  { %v3728_v17 = vpop.xlane.xlu0 %1973  ;;  %v2017_v8 = vshra.s32 %v2015_v19, 16  ;;  %v2016_v20 = vand.u32 65535, %v2015_v19 }
0x1715   :  { %vm2012_vm5 = vcmp.eq.f32.partialorder %v3718_v7, %v3728_v17 }
0x1716   :  { %v2019_v51 = vcvt.s32.f32 %v2017_v8  ;;  %v2014_v61 = vsel %vm2012_vm5, %v3163_v40, 16  ;;  %v2018_v35 = vcvt.s32.f32 %v2016_v20  ;;  %vm2335_vm5 = vcmask 56320  }
0x1717   :  { %v2030_v13 = vsel %vm80_vm1, %v2014_v61, 2147483647 }
0x1718   :  { %2020 = vmin.xlane.f32.xlu0 %v2019_v51  ;;  %v2032_v15 = vshra.s32 %v2030_v13, 16  ;;  %v2031_v12 = vand.u32 65535, %v2030_v13 }
0x171a   :  { %v2034_v18 = vcvt.s32.f32 %v2032_v15  ;;  %v2033_v33 = vcvt.s32.f32 %v2031_v12 }
0x171c   :  { %2035 = vmin.xlane.f32.xlu1 %v2034_v18 }
0x17a5   :  { %v2021_v26 = vpop.xlane.xlu0 %2020 }
0x17a6   :  { %vm2022_vm6 = vcmp.eq.f32.partialorder %v2019_v51, %v2021_v26  ;;  %v2027_v54 = vcvt.f32.s32 %v2021_v26 }
0x17a7   :  { %v2023_v24 = vsel %vm2022_vm6, %v2018_v35, inf }
0x17a8   :  { %2024 = vmin.xlane.f32.xlu0 %v2023_v24  ;;  %v2028_v49 = vshll.u32 %v2027_v54, 16 }
0x17a9   :  { %v2036_v53 = vpop.xlane.xlu1 %2035 }
0x17aa   :  { %vm2037_vm7 = vcmp.eq.f32.partialorder %v2034_v18, %v2036_v53  ;;  %v2042_v43 = vcvt.f32.s32 %v2036_v53 }
0x17ab   :  { %v2038_v39 = vsel %vm2037_vm7, %v2033_v33, inf }
0x17ac   :  { %2039 = vmin.xlane.f32.xlu1 %v2038_v39  ;;  %v2043_v19 = vshll.u32 %v2042_v43, 16 }
0x17bd   :  { %2057 = vrot.lane.b32.xlu1 %v1882_v38, %s3030_s1 }
0x17be   :  { %2055 = vrot.lane.b32.xlu0 %v1881_v36, %s3030_s1 }
0x1835   :  { %v2025_v45 = vpop.xlane.xlu0 %2024 }
0x1836   :  { %v2026_v11 = vcvt.f32.s32 %v2025_v45 }
0x1838   :  { %v2029_v23 = vadd.s32 %v2028_v49, %v2026_v11 }
0x1839   :  { %v2040_v6 = vpop.xlane.xlu1 %2039  ;;  %v2056_v38 = vpop.permute.xlu0 %2055 }
0x183a   :  { %v2045_v8 = vcvt.s32.f32 %v2029_v23  ;;  %vm2047_vm12 = vcmp.eq.s32.totalorder %v3163_v40, %v2029_v23  ;;  %v2041_v51 = vcvt.f32.s32 %v2040_v6  ;;  %v306_v23 = vsub.f32 %v3154_v28, %v3165_v41 }
0x183b   :  { %v2049_v61 = vsel %vm2047_vm12, 1.0, %v3028_v1 }
0x183c   :  { %v2051_v13 = vpack.c.bf16 %v2049_v61, %v2049_v61  ;;  %v2044_v15 = vadd.s32 %v2043_v19, %v2041_v51  ;;  %v3740_v36 = vsel %vm2332_vm10, %v3658_v58, %v2045_v8  ;;  %v308_v19 = vmul.f32 1.442695, %v306_v23 }
0x183d   :  { %v2058_v12 = vpop.permute.xlu1 %2057  ;;  %v625_v8 = vsub.f32 %v3279_v48, %v3288_v2  ;;  %v896_v61 = vsub.f32 %v3356_v37, %v3366_v50 }
0x183e   :  { %v2061_v18 = vsel %vm80_vm1, %v2051_v13, %v2056_v38  ;;  %v2046_v20 = vcvt.s32.f32 %v2044_v15  ;;  %vm2048_vm15 = vcmp.eq.s32.totalorder %v3163_v40, %v2044_v15  ;;  %v895_v15 = vsub.f32 %v3351_v29, %v3360_v47 }
0x183f   :  { %v2050_v26 = vsel %vm2048_vm15, 1.0, %v3028_v1  ;;  %2815 = vmatmul.mubr.msk.bf16.vlgmr.msra.gmra.mrb[56].mxu0 %vm426_vm8, %v2061_v18  ;;  %v627_v13 = vmul.f32 1.442695, %v625_v8  ;;  %v899_v38 = vmul.f32 1.442695, %v896_v61  ;;  %v1166_v18 = vsub.f32 %v3428_v30, %v3438_v42 }
0x1840   :  { %v2052_v35 = vpack.c.bf16 %v2050_v26, %v2050_v26  ;;  %2829 = vmatpush3.bf16.msra.mxu0 %v3535_v14  ;;  %2832 = vmatprep.mubr.msk.bf16.mxu0 %vm3029_vm0, %v3028_v1  ;;  %v3751_v58 = vsel %vm2332_vm10, %v3669_v4, %v2046_v20  ;;  %v897_v26 = vmul.f32 1.442695, %v895_v15 }
0x1841   :  { %2830 = vmatprep.subr.bf16.mxu0 %v3028_v1 }
0x1842   :  { %v2064_v24 = vsel %vm80_vm1, %v2052_v35, %v2058_v12  ;;  %v1165_v35 = vsub.f32 %v3423_v16, %v3432_v21 }
0x1843   :  { %2825 = vmatmul.mubr.msk.bf16.vlgmr.msra.gmra.mrb[56].mxu1 %vm426_vm8, %v2064_v24 }
0x1844   :  { %2831 = vmatpush3.bf16.msra.mxu0 %v3546_v52  ;;  %2837 = vmatpush3.bf16.msra.mxu1 %v3552_v22 }
0x1845   :  { %2838 = vmatprep.subr.bf16.mxu1 %v3028_v1  ;;  %2840 = vmatprep.mubr.msk.bf16.mxu1 %vm3029_vm0, %v3028_v1 }
0x1848   :  { %2839 = vmatpush3.bf16.msra.mxu1 %v3562_v27 }
0x1912   :  { %v2101_v14 = vpop.f32.mrb[56].mxu0 }
0x1913   :  { %v2102_v4 = vadd.f32 %v3685_v59, %v2101_v14  ;;  %v2816_v53 = vpop.f32.mrb[57].mxu0  ;;  %v307_v59 = vsub.f32 %v3157_v31, %v3171_v44  ;;  %v1169_v14 = vmul.f32 1.442695, %v1166_v18 }
0x1914   :  { %v2104_v33 = vpop.f32.mrb[58].mxu0 }
0x1915   :  { %2890 = vtanh.f32 %v2102_v4  ;;  %v2817_v39 = vpop.f32.mrb[59].mxu0  ;;  %v310_v6 = vmul.f32 1.442695, %v307_v59  ;;  %v1436_v4 = vsub.f32 %v3500_v63, %v3510_v32 }
0x1916   :  { %v2143_v54 = vpop.f32.mrb[56].mxu1 }
0x1917   :  { %v2144_v45 = vadd.f32 %v3691_v62, %v2143_v54  ;;  %v2826_v52 = vpop.f32.mrb[57].mxu1  ;;  %v626_v62 = vsub.f32 %v3284_v55, %v3294_v9 }
0x1918   :  { %v2146_v49 = vpop.f32.mrb[58].mxu1  ;;  %v1167_v52 = vmul.f32 1.442695, %v1165_v35 }
0x1919   :  { %2892 = vtanh.f32 %v2144_v45  ;;  %v2827_v22 = vpop.f32.mrb[59].mxu1  ;;  %v629_v51 = vmul.f32 1.442695, %v626_v62 }
0x191a   :  { %2894 = vpow2.f32 %v310_v6 }
0x191b   :  { %2896 = vpow2.f32 %v308_v19  ;;  %v1705_v19 = vsub.f32 %v3625_v57, %v3639_v0 }
0x191c   :  { %2898 = vpow2.f32 %v629_v51  ;;  %v1976_v51 = vsub.f32 %v3718_v7, %v3728_v17 }
0x191d   :  { %2900 = vpow2.f32 %v627_v13  ;;  %v1707_v18 = vmul.f32 1.442695, %v1705_v19 }
0x191e   :  { %2902 = vpow2.f32 %v899_v38 }
0x191f   :  { %v2891_v43 = vpop.eup %2890  ;;  %2904 = vpow2.f32 %v897_v26  ;;  %v1979_v26 = vmul.f32 1.442695, %v1976_v51 }
0x1920   :  { %v2151_v11 = vpack.c.bf16 %v2891_v43, %v2891_v43  ;;  %2906 = vpow2.f32 %v1169_v14  ;;  %v1439_v43 = vmul.f32 1.442695, %v1436_v4 }
0x1921   :  { %2908 = vpow2.f32 %v1167_v52 }
0x1922   :  { %2833 = vmatmul.mubr.msk.bf16.vlgmr.msra.gmra.mrb[60].mxu0 %vm201_vm2, %v2151_v11  ;;  %v1706_v11 = vsub.f32 %v3635_v10, %v3645_v34  ;;  %2910 = vpow2.f32 %v1439_v43 }
0x1923   :  { %v2893_v1 = vpop.eup %2892 }
0x1924   :  { %v2152_v27 = vpack.c.bf16 %v2893_v1, %v2893_v1  ;;  %v2895_v54 = vpop.eup %2894  ;;  %v1709_v8 = vmul.f32 1.442695, %v1706_v11 }
0x1925   :  { %v315_v6 = vsel %vm80_vm1, %v2895_v54, 0.0 }
0x1926   :  { %2841 = vmatmul.mubr.msk.bf16.vlgmr.msra.gmra.mrb[60].mxu1 %vm201_vm2, %v2152_v27  ;;  %v2897_v27 = vpop.eup %2896 }
0x1927   :  { %v2899_v62 = vpop.eup %2898  ;;  %v312_v13 = vsel %vm80_vm1, %v2897_v27, 0.0 }
0x1928   :  { %v2901_v61 = vpop.eup %2900  ;;  %v634_v15 = vsel %vm80_vm1, %v2899_v62, 0.0 }
0x1929   :  { %v2903_v38 = vpop.eup %2902 }
0x192a   :  { %v2905_v35 = vpop.eup %2904  ;;  %v904_v14 = vsel %vm80_vm1, %v2903_v38, 0.0 }
0x192b   :  { %v2907_v4 = vpop.eup %2906 }
0x192c   :  { %v1174_v54 = vsel %vm80_vm1, %v2907_v4, 0.0 }
0x19f5   :  { %v2190_v20 = vpop.f32.mrb[60].mxu0 }
0x19f6   :  { %v3783_v12 = vadd.f32 %v3622_v56, %v2190_v20  ;;  %v2834_v24 = vpop.f32.mrb[61].mxu0  ;;  %v1435_v56 = vsub.f32 %v3495_v60, %v3504_v25  ;;  %v1975_v20 = vsub.f32 %v3713_v46, %v3722_v5 }
0x19f7   :  { %v2193_v53 = vpop.f32.mrb[62].mxu0  ;;  %v631_v24 = vsel %vm80_vm1, %v2901_v61, 0.0 }
0x19f8   :  { %v2835_v33 = vpop.f32.mrb[63].mxu0  ;;  %v2239_v39 = vsel %vm80_vm1, %v3783_v12, -inf  ;;  %v1977_v53 = vmul.f32 1.442695, %v1975_v20 }
0x19f9   :  { %v2233_v45 = vpop.f32.mrb[60].mxu1  ;;  %2240 = vmax.xlane.f32.xlu1 %v2239_v39  ;;  %v2909_v33 = vpop.eup %2908  ;;  %v901_v39 = vsel %vm80_vm1, %v2905_v35, 0.0 }
0x19fa   :  { %v3792_v49 = vadd.f32 %v3632_v3, %v2233_v45  ;;  %v2842_v22 = vpop.f32.mrb[61].mxu1  ;;  %v1437_v3 = vmul.f32 1.442695, %v1435_v56  ;;  %v2911_v45 = vpop.eup %2910  ;;  %v1171_v56 = vsel %vm80_vm1, %v2909_v33, 0.0 }
0x19fb   :  { %v2236_v1 = vpop.f32.mrb[62].mxu1  ;;  %v1444_v22 = vsel %vm80_vm1, %v2911_v45, 0.0 }
0x19fc   :  { %v2843_v59 = vpop.f32.mrb[63].mxu1  ;;  %v2242_v23 = vsel %vm80_vm1, %v3792_v49, -inf  ;;  %2912 = vpow2.f32 %v1437_v3 }
0x19fd   :  { %2243 = vmax.xlane.f32.xlu0 %v2242_v23  ;;  %316 = vadd.xlane.f32.xlu1 %v315_v6  ;;  %2914 = vpow2.f32 %v1709_v8 }
0x19fe   :  { %2916 = vpow2.f32 %v1707_v18 }
0x19ff   :  { %2918 = vpow2.f32 %v1979_v26 }
0x1a00   :  { %2920 = vpow2.f32 %v1977_v53 }
0x1a01   :  { %313 = vadd.xlane.f32.xlu0 %v312_v13  ;;  %635 = vadd.xlane.f32.xlu1 %v634_v15 }
0x1a05   :  { %632 = vadd.xlane.f32.xlu0 %v631_v24  ;;  %905 = vadd.xlane.f32.xlu1 %v904_v14 }
0x1a06   :  { %v2913_v52 = vpop.eup %2912 }
0x1a07   :  { %v2915_v43 = vpop.eup %2914  ;;  %v1441_v1 = vsel %vm80_vm1, %v2913_v52, 0.0 }
0x1a08   :  { %v2917_v11 = vpop.eup %2916  ;;  %v1714_v27 = vsel %vm80_vm1, %v2915_v43, 0.0 }
0x1a09   :  { %902 = vadd.xlane.f32.xlu0 %v901_v39  ;;  %1175 = vadd.xlane.f32.xlu1 %v1174_v54  ;;  %v2919_v59 = vpop.eup %2918  ;;  %v1711_v23 = vsel %vm80_vm1, %v2917_v11, 0.0 }
0x1a0a   :  { %v1984_v6 = vsel %vm80_vm1, %v2919_v59, 0.0  ;;  %v2921_v62 = vpop.eup %2920 }
0x1a0b   :  { %v1981_v3 = vsel %vm80_vm1, %v2921_v62, 0.0 }
0x1a0d   :  { %1172 = vadd.xlane.f32.xlu0 %v1171_v56  ;;  %1445 = vadd.xlane.f32.xlu1 %v1444_v22 }
0x1a11   :  { %1442 = vadd.xlane.f32.xlu0 %v1441_v1  ;;  %1715 = vadd.xlane.f32.xlu1 %v1714_v27 }
0x1a15   :  { %1712 = vadd.xlane.f32.xlu0 %v1711_v23  ;;  %1985 = vadd.xlane.f32.xlu1 %v1984_v6 }
0x1a19   :  { %1982 = vadd.xlane.f32.xlu0 %v1981_v3 }
0x1a86   :  { %v3818_v19 = vpop.xlane.xlu1 %2240 }
0x1a87   :  { %v2245_v8 = vsub.f32 %v3783_v12, %v3818_v19  ;;  %vm2281_vm0 = vcmp.eq.f32.partialorder %v3783_v12, %v3818_v19 }
0x1a88   :  { %v2283_v26 = vsel %vm2281_vm0, %v3163_v40, 16 }
0x1a89   :  { %v2247_v51 = vmul.f32 1.442695, %v2245_v8  ;;  %v3832_v14 = vsel %vm80_vm1, %v2283_v26, 2147483647 }
0x1a8a   :  { %v3822_v61 = vpop.xlane.xlu0 %2243  ;;  %v317_v13 = vpop.xlane.xlu1 %316  ;;  %v2287_v33 = vshra.s32 %v3832_v14, 16 }
0x1a8b   :  { %2922 = vpow2.f32 %v2247_v51  ;;  %v2246_v15 = vsub.f32 %v3792_v49, %v3822_v61  ;;  %vm2282_vm2 = vcmp.eq.f32.partialorder %v3792_v49, %v3822_v61 }
0x1a8c   :  { %2924 = vlog2.f32 %v317_v13  ;;  %v2284_v4 = vsel %vm2282_vm2, %v3163_v40, 16  ;;  %v3841_v40 = vcvt.s32.f32 %v2287_v33 }
0x1a8d   :  { %v2249_v38 = vmul.f32 1.442695, %v2246_v15  ;;  %v3838_v56 = vsel %vm80_vm1, %v2284_v4, 2147483647 }
0x1a8e   :  { %v314_v18 = vpop.xlane.xlu0 %313  ;;  %v636_v20 = vpop.xlane.xlu1 %635  ;;  %v2302_v1 = vshra.s32 %v3838_v56, 16 }
0x1a8f   :  { %2926 = vpow2.f32 %v2249_v38 }
0x1a90   :  { %2928 = vlog2.f32 %v314_v18  ;;  %v3850_v38 = vcvt.s32.f32 %v2302_v1 }
0x1a91   :  { %2930 = vlog2.f32 %v636_v20 }
0x1a92   :  { %v633_v35 = vpop.xlane.xlu0 %632  ;;  %v906_v24 = vpop.xlane.xlu1 %905 }
0x1a93   :  { %2932 = vlog2.f32 %v633_v35 }
0x1a94   :  { %2934 = vlog2.f32 %v906_v24 }
0x1a95   :  { %v2923_v53 = vpop.eup %2922 }
0x1a96   :  { %v2925_v39 = vpop.eup %2924  ;;  %v903_v54 = vpop.xlane.xlu0 %902  ;;  %v2251_v52 = vsel %vm80_vm1, %v2923_v53, 0.0 }
0x1a97   :  { %v1176_v45 = vpop.xlane.xlu1 %1175  ;;  %v321_v22 = vmul.f32 0.6931472, %v2925_v39  ;;  %2936 = vlog2.f32 %v903_v54  ;;  %2252 = vadd.xlane.f32.xlu0 %v2251_v52 }
0x1a98   :  { %2938 = vlog2.f32 %v1176_v45 }
0x1a99   :  { %v2927_v43 = vpop.eup %2926  ;;  %v323_v11 = vadd.f32 %v321_v22, %v3171_v44 }
0x1a9a   :  { %v2929_v27 = vpop.eup %2928  ;;  %v1173_v59 = vpop.xlane.xlu0 %1172  ;;  %v2254_v6 = vsel %vm80_vm1, %v2927_v43, 0.0 }
0x1a9b   :  { %v1446_v23 = vpop.xlane.xlu1 %1445  ;;  %v2931_v62 = vpop.eup %2930  ;;  %v319_v3 = vmul.f32 0.6931472, %v2929_v27  ;;  %2940 = vlog2.f32 %v1173_v59  ;;  %2255 = vadd.xlane.f32.xlu1 %v2254_v6  ;;  %2290 = vmin.xlane.f32.xlu0 %v3841_v40  ;;  %v3847_v8 = vsub.f32 %v3157_v31, %v323_v11  ;;  %v341_v53 = vsub.f32 %v3171_v44, %v323_v11 }
0x1a9c   :  { %v640_v51 = vmul.f32 0.6931472, %v2931_v62  ;;  %2942 = vlog2.f32 %v1446_v23 }
0x1a9d   :  { %v2933_v13 = vpop.eup %2932  ;;  %v322_v15 = vadd.f32 %v319_v3, %v3165_v41  ;;  %v328_v18 = vmul.f32 1.442695, %v3847_v8 }
0x1a9e   :  { %v2935_v20 = vpop.eup %2934  ;;  %v642_v26 = vadd.f32 %v640_v51, %v3294_v9  ;;  %v638_v35 = vmul.f32 0.6931472, %v2933_v13  ;;  %v1443_v24 = vpop.xlane.xlu0 %1442 }
0x1a9f   :  { %v1716_v4 = vpop.xlane.xlu1 %1715  ;;  %v910_v33 = vmul.f32 0.6931472, %v2935_v20  ;;  %2944 = vlog2.f32 %v1443_v24  ;;  %2305 = vmin.xlane.f32.xlu1 %v3850_v38  ;;  %v3857_v31 = vsub.f32 %v3154_v28, %v322_v15  ;;  %v340_v22 = vsub.f32 %v3165_v41, %v322_v15 }
0x1aa0   :  { %v660_v39 = vsub.f32 %v3294_v9, %v642_v26  ;;  %v641_v54 = vadd.f32 %v638_v35, %v3288_v2  ;;  %2946 = vlog2.f32 %v1716_v4  ;;  %v3862_v45 = vsub.f32 %v3284_v55, %v642_v26 }
0x1aa1   :  { %v2937_v52 = vpop.eup %2936  ;;  %v912_v44 = vadd.f32 %v910_v33, %v3366_v50  ;;  %2948 = vpow2.f32 %v328_v18  ;;  %v326_v43 = vmul.f32 1.442695, %v3857_v31 }
0x1aa2   :  { %v2939_v11 = vpop.eup %2938  ;;  %v2339_v28 = vsel %vm2317_vm14, %v341_v53, %v660_v39  ;;  %v659_v1 = vsub.f32 %v3288_v2, %v641_v54  ;;  %v908_v9 = vmul.f32 0.6931472, %v2937_v52  ;;  %v1713_v27 = vpop.xlane.xlu0 %1712  ;;  %v647_v23 = vmul.f32 1.442695, %v3862_v45 }
0x1aa3   :  { %v1986_v59 = vpop.xlane.xlu1 %1985  ;;  %v930_v55 = vsub.f32 %v3366_v50, %v912_v44  ;;  %v1180_v6 = vmul.f32 0.6931472, %v2939_v11  ;;  %2950 = vlog2.f32 %v1713_v27  ;;  %v3872_v41 = vsub.f32 %v3279_v48, %v641_v54 }
0x1aa4   :  { %v2338_v62 = vsel %vm2317_vm14, %v340_v22, %v659_v1  ;;  %v911_v3 = vadd.f32 %v908_v9, %v3360_v47  ;;  %2952 = vlog2.f32 %v1986_v59  ;;  %v3877_v51 = vsub.f32 %v3356_v37, %v912_v44 }
0x1aa5   :  { %v2941_v2 = vpop.eup %2940  ;;  %v2341_v13 = vsel %vm2320_vm9, %v2339_v28, %v930_v55  ;;  %v1182_v15 = vadd.f32 %v1180_v6, %v3438_v42  ;;  %2954 = vpow2.f32 %v326_v43  ;;  %v645_v50 = vmul.f32 1.442695, %v3872_v41 }
0x1aa6   :  { %v2943_v18 = vpop.eup %2942  ;;  %v929_v48 = vsub.f32 %v3360_v47, %v911_v3  ;;  %v1178_v20 = vmul.f32 0.6931472, %v2941_v2  ;;  %v1983_v26 = vpop.xlane.xlu0 %1982  ;;  %2956 = vpow2.f32 %v647_v23  ;;  %v917_v35 = vmul.f32 1.442695, %v3877_v51 }
0x1aa7   :  { %v1200_v24 = vsub.f32 %v3438_v42, %v1182_v15  ;;  %v1450_v37 = vmul.f32 0.6931472, %v2943_v18  ;;  %2958 = vlog2.f32 %v1983_v26  ;;  %v3886_v4 = vsub.f32 %v3351_v29, %v911_v3 }
0x1aa8   :  { %v2340_v53 = vsel %vm2320_vm9, %v2338_v62, %v929_v48  ;;  %v1181_v33 = vadd.f32 %v1178_v20, %v3432_v21  ;;  %2960 = vpow2.f32 %v645_v50  ;;  %v3891_v39 = vsub.f32 %v3428_v30, %v1182_v15 }
0x1aa9   :  { %v2945_v47 = vpop.eup %2944  ;;  %v1452_v54 = vadd.f32 %v1450_v37, %v3510_v32  ;;  %2962 = vpow2.f32 %v917_v35  ;;  %v915_v52 = vmul.f32 1.442695, %v3886_v4  ;;  %v2343_v42 = vsel %vm2323_vm4, %v2341_v13, %v1200_v24 }
0x1aaa   :  { %v2947_v22 = vpop.eup %2946  ;;  %v1199_v29 = vsub.f32 %v3432_v21, %v1181_v33  ;;  %v1448_v44 = vmul.f32 0.6931472, %v2945_v47  ;;  %v1187_v43 = vmul.f32 1.442695, %v3891_v39  ;;  %v3899_v11 = vsub.f32 %v3423_v16, %v1181_v33 }
0x1aab   :  { %v2949_v28 = vpop.eup %2948  ;;  %v1470_v30 = vsub.f32 %v3510_v32, %v1452_v54  ;;  %v1720_v1 = vmul.f32 0.6931472, %v2947_v22  ;;  %2964 = vpow2.f32 %v915_v52  ;;  %v3903_v9 = vsub.f32 %v3500_v63, %v1452_v54 }
0x1aac   :  { %v1451_v27 = vadd.f32 %v1448_v44, %v3504_v25  ;;  %v331_v59 = vmul.f32 %v2949_v28, %v3847_v8  ;;  %2966 = vpow2.f32 %v1187_v43  ;;  %v1185_v21 = vmul.f32 1.442695, %v3899_v11 }
0x1aad   :  { %v2951_v23 = vpop.eup %2950  ;;  %v1722_v55 = vadd.f32 %v1720_v1, %v3645_v34  ;;  %v1457_v16 = vmul.f32 1.442695, %v3903_v9  ;;  %v2345_v6 = vsel %vm2326_vm13, %v2343_v42, %v1470_v30  ;;  %v2342_v32 = vsel %vm2323_vm4, %v2340_v53, %v1199_v29 }
0x1aae   :  { %v2953_v62 = vpop.eup %2952  ;;  %v1469_v63 = vsub.f32 %v3504_v25, %v1451_v27  ;;  %v1718_v3 = vmul.f32 0.6931472, %v2951_v23  ;;  %v335_v2 = vsel %vm80_vm1, %v331_v59, 0.0  ;;  %2968 = vpow2.f32 %v1185_v21 }
0x1aaf   :  { %v2955_v8 = vpop.eup %2954  ;;  %v1740_v13 = vsub.f32 %v3645_v34, %v1722_v55  ;;  %v1990_v15 = vmul.f32 0.6931472, %v2953_v62  ;;  %336 = vadd.xlane.f32.xlu1 %v335_v2  ;;  %2970 = vpow2.f32 %v1457_v16  ;;  %v1453_v50 = vsub.f32 %v3495_v60, %v1451_v27 }
0x1ab0   :  { %v2957_v18 = vpop.eup %2956  ;;  %v1721_v48 = vadd.f32 %v1718_v3, %v3639_v0  ;;  %v330_v20 = vmul.f32 %v2955_v8, %v3857_v31  ;;  %v1724_v26 = vsub.f32 %v3635_v10, %v1722_v55  ;;  %v2344_v25 = vsel %vm2326_vm13, %v2342_v32, %v1469_v63 }
0x1ab1   :  { %v2959_v35 = vpop.eup %2958  ;;  %v1992_v24 = vadd.f32 %v1990_v15, %v3728_v17  ;;  %v650_v37 = vmul.f32 %v2957_v18, %v3862_v45  ;;  %v1455_v34 = vmul.f32 1.442695, %v1453_v50  ;;  %v2347_v53 = vsel %vm2329_vm11, %v2345_v6, %v1740_v13 }
0x1ab2   :  { %v2961_v33 = vpop.eup %2960  ;;  %v1739_v60 = vsub.f32 %v3639_v0, %v1721_v48  ;;  %v1988_v47 = vmul.f32 0.6931472, %v2959_v35  ;;  %v332_v54 = vsel %vm80_vm1, %v330_v20, 0.0  ;;  %v1727_v52 = vmul.f32 1.442695, %v1724_v26 }
0x1ab3   :  { %v2963_v31 = vpop.eup %2962  ;;  %v2010_v10 = vsub.f32 %v3728_v17, %v1992_v24  ;;  %333 = vadd.xlane.f32.xlu0 %v332_v54  ;;  %v654_v42 = vsel %vm80_vm1, %v650_v37, 0.0  ;;  %v649_v22 = vmul.f32 %v2961_v33, %v3872_v41  ;;  %2972 = vpow2.f32 %v1455_v34 }
0x1ab4   :  { %v1991_v45 = vadd.f32 %v1988_v47, %v3722_v5  ;;  %655 = vadd.xlane.f32.xlu1 %v654_v42  ;;  %v920_v29 = vmul.f32 %v2963_v31, %v3877_v51  ;;  %2974 = vpow2.f32 %v1727_v52  ;;  %v1723_v0 = vsub.f32 %v3625_v57, %v1721_v48 }
0x1ab5   :  { %v2965_v44 = vpop.eup %2964  ;;  %v651_v43 = vsel %vm80_vm1, %v649_v22, 0.0  ;;  %v1994_v28 = vsub.f32 %v3718_v7, %v1992_v24  ;;  %v3934_v17 = vsel %vm2332_vm10, %v2347_v53, %v2010_v10  ;;  %v2346_v30 = vsel %vm2329_vm11, %v2344_v25, %v1739_v60 }
0x1ab6   :  { %v2967_v41 = vpop.eup %2966  ;;  %v2009_v1 = vsub.f32 %v3722_v5, %v1991_v45  ;;  %v924_v27 = vsel %vm80_vm1, %v920_v29, 0.0  ;;  %v919_v51 = vmul.f32 %v2965_v44, %v3886_v4  ;;  %v1725_v59 = vmul.f32 1.442695, %v1723_v0 }
0x1ab7   :  { %652 = vadd.xlane.f32.xlu0 %v651_v43  ;;  %v1190_v57 = vmul.f32 %v2967_v41, %v3891_v39  ;;  %v1997_v21 = vmul.f32 1.442695, %v1994_v28  ;;  %v1993_v23 = vsub.f32 %v3713_v46, %v1991_v45 }
0x1ab8   :  { %v2969_v7 = vpop.eup %2968  ;;  %925 = vadd.xlane.f32.xlu1 %v924_v27  ;;  %v921_v55 = vsel %vm80_vm1, %v919_v51, 0.0  ;;  %2976 = vpow2.f32 %v1725_v59  ;;  %v3944_v16 = vsel %vm2332_vm10, %v2346_v30, %v2009_v1 }
0x1ab9   :  { %v2971_v5 = vpop.eup %2970  ;;  %v1194_v6 = vsel %vm80_vm1, %v1190_v57, 0.0  ;;  %v1189_v4 = vmul.f32 %v2969_v7, %v3899_v11  ;;  %2978 = vpow2.f32 %v1997_v21  ;;  %v1995_v32 = vmul.f32 1.442695, %v1993_v23 }
0x1aba   :  { %v1460_v39 = vmul.f32 %v2971_v5, %v3903_v9 }
0x1abb   :  { %922 = vadd.xlane.f32.xlu0 %v921_v55  ;;  %2980 = vpow2.f32 %v1995_v32  ;;  %v1191_v46 = vsel %vm80_vm1, %v1189_v4, 0.0 }
0x1abc   :  { %1195 = vadd.xlane.f32.xlu1 %v1194_v6  ;;  %v1464_v63 = vsel %vm80_vm1, %v1460_v39, 0.0 }
0x1abd   :  { %v2973_v62 = vpop.eup %2972 }
0x1abe   :  { %v2975_v3 = vpop.eup %2974  ;;  %v1459_v2 = vmul.f32 %v2973_v62, %v1453_v50 }
0x1abf   :  { %1192 = vadd.xlane.f32.xlu0 %v1191_v46  ;;  %v1730_v8 = vmul.f32 %v2975_v3, %v1724_v26 }
0x1ac0   :  { %1465 = vadd.xlane.f32.xlu1 %v1464_v63  ;;  %v1461_v13 = vsel %vm80_vm1, %v1459_v2, 0.0 }
0x1ac1   :  { %v1734_v11 = vsel %vm80_vm1, %v1730_v8, 0.0 }
0x1ac2   :  { %v2977_v15 = vpop.eup %2976 }
0x1ac3   :  { %v2979_v18 = vpop.eup %2978  ;;  %1462 = vadd.xlane.f32.xlu0 %v1461_v13  ;;  %v1729_v9 = vmul.f32 %v2977_v15, %v1723_v0  ;;  %v2286_v0 = vand.u32 65535, %v3832_v14 }
0x1ac4   :  { %1735 = vadd.xlane.f32.xlu1 %v1734_v11  ;;  %v2000_v48 = vmul.f32 %v2979_v18, %v1994_v28 }
0x1ac5   :  { %v2981_v20 = vpop.eup %2980  ;;  %v1731_v25 = vsel %vm80_vm1, %v1729_v9, 0.0  ;;  %v2288_v28 = vcvt.s32.f32 %v2286_v0 }
0x1ac6   :  { %v2004_v35 = vsel %vm80_vm1, %v2000_v48, 0.0  ;;  %v1999_v24 = vmul.f32 %v2981_v20, %v1993_v23 }
0x1ac7   :  { %1732 = vadd.xlane.f32.xlu0 %v1731_v25 }
0x1ac8   :  { %2005 = vadd.xlane.f32.xlu1 %v2004_v35  ;;  %v2001_v50 = vsel %vm80_vm1, %v1999_v24, 0.0 }
0x1acb   :  { %2002 = vadd.xlane.f32.xlu0 %v2001_v50 }
0x1b24   :  { %v2253_v26 = vpop.xlane.xlu0 %2252 }
0x1b25   :  { %2982 = vlog2.f32 %v2253_v26 }
0x1b28   :  { %v2256_v37 = vpop.xlane.xlu1 %2255  ;;  %v3960_v45 = vpop.xlane.xlu0 %2290 }
0x1b29   :  { %2984 = vlog2.f32 %v2256_v37  ;;  %vm2292_vm8 = vcmp.eq.f32.partialorder %v3841_v40, %v3960_v45  ;;  %v2297_v25 = vcvt.f32.s32 %v3960_v45 }
0x1b2a   :  { %v2293_v41 = vsel %vm2292_vm8, %v2288_v28, inf }
0x1b2f   :  { %v2983_v34 = vpop.eup %2982 }
0x1b30   :  { %v2258_v53 = vmul.f32 0.6931472, %v2983_v34 }
0x1b32   :  { %v2261_v33 = vadd.f32 %v2258_v53, %v3818_v19 }
0x1b33   :  { %v2985_v60 = vpop.eup %2984 }
0x1b34   :  { %v2260_v47 = vmul.f32 0.6931472, %v2985_v60  ;;  %v2263_v54 = vsub.f32 %v3783_v12, %v2261_v33  ;;  %v3966_v12 = vpop.xlane.xlu1 %2305  ;;  %v2279_v40 = vsub.f32 %v3818_v19, %v2261_v33 }
0x1b35   :  { %vm2307_vm3 = vcmp.eq.f32.partialorder %v3850_v38, %v3966_v12  ;;  %v2312_v45 = vcvt.f32.s32 %v3966_v12 }
0x1b36   :  { %v2262_v52 = vadd.f32 %v2260_v47, %v3822_v61  ;;  %v2265_v31 = vmul.f32 1.442695, %v2263_v54 }
0x1b38   :  { %2986 = vpow2.f32 %v2265_v31  ;;  %v2264_v10 = vsub.f32 %v3792_v49, %v2262_v52  ;;  %v2301_v49 = vand.u32 65535, %v3838_v56  ;;  %v2280_v51 = vsub.f32 %v3822_v61, %v2262_v52 }
0x1b39   :  { %v2350_v56 = vsel %vm2335_vm5, %v3944_v16, %v2279_v40  ;;  %v2298_v31 = vshll.u32 %v2297_v25, 16 }
0x1b3a   :  { %v2267_v42 = vmul.f32 1.442695, %v2264_v10  ;;  %v2303_v14 = vcvt.s32.f32 %v2301_v49  ;;  %v2351_v59 = vsel %vm2335_vm5, %v3934_v17, %v2280_v51 }
0x1b3c   :  { %2988 = vpow2.f32 %v2267_v42  ;;  %v2308_v27 = vsel %vm2307_vm3, %v2303_v14, inf  ;;  %v337_v57 = vpop.xlane.xlu1 %336 }
0x1b3d   :  { %v339_v18 = vsub.f32 0.0, %v337_v57 }
0x1b40   :  { %v334_v38 = vpop.xlane.xlu0 %333 }
0x1b41   :  { %v656_v23 = vpop.xlane.xlu1 %655  ;;  %v338_v46 = vsub.f32 0.0, %v334_v38 }
0x1b42   :  { %v2987_v22 = vpop.eup %2986  ;;  %v658_v3 = vsub.f32 0.0, %v656_v23 }
0x1b43   :  { %v2269_v29 = vmul.f32 %v2987_v22, %v2263_v54 }
0x1b44   :  { %v653_v21 = vpop.xlane.xlu0 %652  ;;  %v2353_v26 = vsel %vm2317_vm14, %v339_v18, %v658_v3 }
0x1b45   :  { %v2271_v44 = vsel %vm80_vm1, %v2269_v29, 0.0  ;;  %v926_v61 = vpop.xlane.xlu1 %925  ;;  %v657_v17 = vsub.f32 0.0, %v653_v21 }
0x1b46   :  { %v2989_v43 = vpop.eup %2988  ;;  %2272 = vadd.xlane.f32.xlu0 %v2271_v44  ;;  %v928_v13 = vsub.f32 0.0, %v926_v61 }
0x1b47   :  { %v2270_v30 = vmul.f32 %v2989_v43, %v2264_v10  ;;  %v2352_v2 = vsel %vm2317_vm14, %v338_v46, %v657_v17  ;;  %vm2382_vm14 = vcmask 64512  }
0x1b48   :  { %v923_v7 = vpop.xlane.xlu0 %922  ;;  %v2355_v33 = vsel %vm2320_vm9, %v2353_v26, %v928_v13 }
0x1b49   :  { %v2274_v1 = vsel %vm80_vm1, %v2270_v30, 0.0  ;;  %v1196_v19 = vpop.xlane.xlu1 %1195  ;;  %v927_v39 = vsub.f32 0.0, %v923_v7 }
0x1b4a   :  { %2294 = vmin.xlane.f32.xlu0 %v2293_v41  ;;  %2275 = vadd.xlane.f32.xlu1 %v2274_v1  ;;  %v1198_v9 = vsub.f32 0.0, %v1196_v19  ;;  %v2313_v41 = vshll.u32 %v2312_v45, 16 }
0x1b4b   :  { %v2354_v11 = vsel %vm2320_vm9, %v2352_v2, %v927_v39  ;;  %vm2387_vm9 = vcmask 195584  }
0x1b4c   :  { %v1193_v55 = vpop.xlane.xlu0 %1192  ;;  %v2357_v54 = vsel %vm2323_vm4, %v2355_v33, %v1198_v9 }
0x1b4d   :  { %v1466_v6 = vpop.xlane.xlu1 %1465  ;;  %v1197_v62 = vsub.f32 0.0, %v1193_v55 }
0x1b4e   :  { %2309 = vmin.xlane.f32.xlu1 %v2308_v27  ;;  %v1468_v35 = vsub.f32 0.0, %v1466_v6 }
0x1b4f   :  { %v2356_v48 = vsel %vm2323_vm4, %v2354_v11, %v1197_v62 }
0x1b50   :  { %v1463_v5 = vpop.xlane.xlu0 %1462  ;;  %v2359_v10 = vsel %vm2326_vm13, %v2357_v54, %v1468_v35 }
0x1b51   :  { %v1736_v32 = vpop.xlane.xlu1 %1735  ;;  %v1467_v16 = vsub.f32 0.0, %v1463_v5 }
0x1b52   :  { %v1738_v37 = vsub.f32 0.0, %v1736_v32 }
0x1b53   :  { %v2358_v24 = vsel %vm2326_vm13, %v2356_v48, %v1467_v16 }
0x1b54   :  { %v1733_v4 = vpop.xlane.xlu0 %1732  ;;  %v2361_v29 = vsel %vm2329_vm11, %v2359_v10, %v1738_v37 }
0x1b55   :  { %v1737_v8 = vsub.f32 0.0, %v1733_v4  ;;  %v2006_v20 = vpop.xlane.xlu1 %2005 }
0x1b56   :  { %v2008_v60 = vsub.f32 0.0, %v2006_v20 }
0x1b57   :  { %v2360_v34 = vsel %vm2329_vm11, %v2358_v24, %v1737_v8 }
0x1b58   :  { %v2003_v63 = vpop.xlane.xlu0 %2002  ;;  %v2363_v43 = vsel %vm2332_vm10, %v2361_v29, %v2008_v60 }
0x1b59   :  { %v2007_v15 = vsub.f32 0.0, %v2003_v63 }
0x1b5b   :  { %v2362_v47 = vsel %vm2332_vm10, %v2360_v34, %v2007_v15 }
0x1b5f   :  { %2370 = vrot.lane.b32.xlu1 %v2351_v59, %s3031_s4 }
0x1b60   :  { %2368 = vrot.lane.b32.xlu0 %v2350_v56, %s3031_s4 }
0x1bd3   :  { %v2273_v50 = vpop.xlane.xlu0 %2272 }
0x1bd4   :  { %v2277_v53 = vsub.f32 0.0, %v2273_v50 }
0x1bd6   :  { %v2364_v52 = vsel %vm2335_vm5, %v2362_v47, %v2277_v53 }
0x1bd7   :  { %v2295_v42 = vpop.xlane.xlu0 %2294  ;;  %2376 = vrot.lane.b32.xlu1 %v2364_v52, %s3030_s1  ;;  %v2276_v22 = vpop.xlane.xlu1 %2275 }
0x1bd8   :  { %v2296_v0 = vcvt.f32.s32 %v2295_v42  ;;  %v2278_v44 = vsub.f32 0.0, %v2276_v22 }
0x1bda   :  { %v2299_v28 = vadd.s32 %v2298_v31, %v2296_v0  ;;  %v2365_v30 = vsel %vm2335_vm5, %v2363_v43, %v2278_v44 }
0x1bdb   :  { %2378 = vrot.lane.b32.xlu1 %v2365_v30, %s3030_s1  ;;  %v2310_v49 = vpop.xlane.xlu1 %2309  ;;  %v2369_v56 = vpop.permute.xlu0 %2368  ;;  %s3032_s1 = smov [#allocation2]  }
0x1bdc   :  { %v2315_v1 = vcvt.s32.f32 %v2299_v28  ;;  %v2311_v14 = vcvt.f32.s32 %v2310_v49  ;;  %s2395_s14 = sshll.u32 %s3032_s1, 4  ;;  %s2396_s14 = int_to_ptr.vmem [resolvable:$true] %s2395_s14 }
0x1bdd   :  { %s3004_s15 = scalar_lea.vmem %s2396_s14, 256  ;;  %p3009_p1 = scmp.lt.s32.totalorder %s2396_s14, %s2396_s14 }
0x1bde   :  { %v2336_v27 = vsel %vm2335_vm5, %v3740_v36, %v2315_v1  ;;  %v2314_v51 = vadd.s32 %v2313_v41, %v2311_v14  ;;  %p3005_p0 = scmp.ne.s32.totalorder %s2396_s14, %s3004_s15  ;;  %p3010_p2 = scmp.lt.s32.totalorder %s3004_s15, %s3004_s15 }
0x1bdf   :  { %v2371_v59 = vpop.permute.xlu1 %2370  ;;  %v2383_v38 = vsel %vm2382_vm14, %v2336_v27, %v2369_v56 }
0x1be0   :  { %v2316_v12 = vcvt.s32.f32 %v2314_v51  ;;  %p3011_p3 = por %p3010_p2, %p3009_p1 }
0x1be2   :  { %v2337_v40 = vsel %vm2335_vm5, %v3751_v58, %v2316_v12  ;;  %p3012_p4 = pnand %p3011_p3, %p3005_p0 }
0x1be3   :  { %v2384_v23 = vsel %vm2382_vm14, %v2337_v40, %v2371_v59 }
0x1c49   :  { %v2377_v57 = vpop.permute.xlu1 %2376 }
0x1c4a   :  { %v2385_v21 = vsel %vm80_vm1, %v2383_v38, %v2377_v57 }
0x1c4b   :  { %2388 = vst.msk [vmem:[#allocation2] sm:$0xff] %vm2387_vm9, %v2385_v21 }
0x1c4d   :  { %v2379_v7 = vpop.permute.xlu1 %2378 }
0x1c4e   :  { %v2386_v36 = vsel %vm80_vm1, %v2384_v23, %v2379_v7 }
0x1c4f   :  { %2389 = vst.msk [vmem:[#allocation2 + $0x8] sm:$0xff] %vm2387_vm9, %v2386_v36 }
0x1c50   :  { %3015 = shalt.err (!%p3012_p4)
}
0x1c51   :  { %s3016_s18 = scalar_lea.hbm %s4024_s7, 256 }
0x1c52   :  { %p3017_p5 = scmp.ne.s32.totalorder %s4024_s7, %s3016_s18  ;;  %p3020_p6 = scmp.lt.u32.totalorder %s3016_s18, %s4024_s7 }
0x1c54   :  { %p3022_p7 = pnand %p3020_p6, %p3017_p5 }
0x1c56   :  { %3025 = shalt.err (!%p3022_p7)
}
0x1c57   :  { %s3033_s21 = smov 128  }
0x1c58   :  { %2401 = dma.vmem_to_hbm [thread:$0]  %s2396_s14, 256, %s4024_s7, [#allocation3], %s3033_s21, %s3033_s21, %s3031_s4  }
0x1c59   :  { %3026 = dma.done.wait [#allocation3], 256  }
0x1c5a   :  { %3027 = vsyncadd [#allocation3], 4294967040 }
0x1c5b   :  { %2405 = vsyncpa [#allocation3], 1 }

</bundles_post_ra>
